<compile_context>
chip_gen: v7x
topology: tpu7x:2x2x1
jax: 0.10.0
libtpu: 0.0.40
codegen_flags: <defaults>
</compile_context>

<pallas_src>
import functools

import jax
import jax.numpy as jnp
from jax.experimental import pallas as pl
from jax.experimental.pallas import tpu as pltpu


def _round_up(x, m):
    return (x + m - 1) // m * m


def _rnn_fc_sigmoid_kernel(x_ref, w_ref, b_ref, wfc_ref, bfc_ref, o_ref, h_scr,
                           *, n_layers, seq_len, fused, needs_mask, half):
    """x_ref: (T_CHUNK, TILE_B, P) matmul-dtype activations for this chunk.
    w_ref: (L, P, P) combined [W_ih;W_hh] stacks (fused) or (2L, P, P) separate stacks.
    b_ref: (L, 1, P) f32 pre-summed biases.  wfc_ref: (P, OUT_P).  bfc_ref: (1, OUT_P).
    o_ref: (TILE_B, OUT_P) f32.  h_scr: (L, TILE_B, P) f32 hidden state carried across
    time chunks."""
    t_idx = pl.program_id(1)
    t_chunk = x_ref.shape[0]
    tile_b = x_ref.shape[1]
    p = x_ref.shape[2]
    mm = w_ref.dtype
    f32 = jnp.float32

    # Zero-init the carried hidden state at the first time chunk of this batch tile.
    @pl.when(t_idx == 0)
    def _init():
        h_scr[...] = jnp.zeros_like(h_scr)

    # Hoist loop-invariant bias loads + broadcasts out of the (unrolled) time loop.
    biases = tuple(jnp.broadcast_to(b_ref[l], (tile_b, p)) for l in range(n_layers))

    # Read the carried hidden state once per chunk; carry it in registers inside the chunk.
    h0 = tuple(h_scr[l] for l in range(n_layers))

    def step(t, hs):
        inp = x_ref[t]                                   # (TILE_B, P), matmul dtype
        new_hs = []
        for l in range(n_layers):
            h = hs[l]                                    # (TILE_B, P) f32
            if fused:
                # Lanes [0, half) of inp and h carry data, lanes [half, P) are exactly 0
                # (zero-padded weight columns), so a single XLU roll packs [x_t ; h] into
                # one 128-lane operand and one MXU matmul replaces two.
                z = (inp.astype(f32) + pltpu.roll(h, shift=half, axis=1)).astype(mm)
                pre = jnp.dot(z, w_ref[l], preferred_element_type=f32)
            else:
                pre = (jnp.dot(inp.astype(mm), w_ref[2 * l],
                               preferred_element_type=f32)
                       + jnp.dot(h.astype(mm), w_ref[2 * l + 1],
                                 preferred_element_type=f32))
            h_new = jnp.tanh(pre + biases[l])
            if needs_mask:
                # Padded timesteps must be a no-op on the recurrent state.
                h_new = jnp.where(t_idx * t_chunk + t < seq_len, h_new, h)
            new_hs.append(h_new)
            inp = h_new                                  # feed next layer
        return tuple(new_hs)

    hs = jax.lax.fori_loop(0, t_chunk, step, h0, unroll=True)

    # Write the carried state back for the next chunk.
    for l in range(n_layers):
        h_scr[l] = hs[l]

    # fc + sigmoid only on the last chunk (output block is resident across the time axis).
    @pl.when(t_idx == pl.num_programs(1) - 1)
    def _finalize():
        logits = (jnp.dot(hs[n_layers - 1].astype(mm), wfc_ref[...],
                          preferred_element_type=f32)
                  + bfc_ref[...])
        o_ref[...] = pl.reciprocal(1.0 + jnp.exp(-logits),
                                   approx=True).astype(o_ref.dtype)


def baseline_rnn_forward(x, rnn_params, fc_w, fc_b, *, tile_b_max=256,
                         t_chunk_max=16, matmul_dtype=jnp.bfloat16):
    """x: (B, T, in_dim) float32.
    rnn_params: list of (w_ih (fan_in, hidden), w_hh (hidden, hidden), b_ih, b_hh).
    fc_w: (hidden, n_out); fc_b: (n_out,).  Returns (B, n_out) float32."""
    B, T, in_dim = x.shape
    hidden, n_out = fc_w.shape
    L = len(rnn_params)
    f32 = jnp.float32

    P = _round_up(max(in_dim, hidden), 128)          # lane-dense feature width
    OUT_P = _round_up(n_out, 128)                    # lane-dense output width
    half = P // 2
    # Fused [x;h] @ [W_ih;W_hh] path needs both halves to fit in 64 lanes.
    fused = (in_dim <= half) and (hidden <= half)

    # Batch tiling: sublane-aligned (16 works for f32 and bf16) and, when batch allows,
    # at least two tiles so the "parallel" axis shards across v7x's two TensorCores.
    b_align = 16
    B_pad = _round_up(B, b_align)
    tile_b = min(tile_b_max, B_pad)
    if B_pad >= 2 * b_align:
        tile_b = min(tile_b, _round_up((B_pad + 1) // 2, b_align))
    B_pad = _round_up(B_pad, tile_b)

    # Time chunking keeps the activation block (and hence VMEM) bounded for long T.
    t_chunk = min(T, max(1, t_chunk_max))
    T_pad = _round_up(T, t_chunk)
    needs_mask = (T_pad != T)

    # Time-major, zero-padded activations (padding stripped / masked later).
    x_t = jnp.transpose(x.astype(f32), (1, 0, 2))                     # (T, B, in_dim)
    x_p = jnp.zeros((T_pad, B_pad, P), f32).at[:T, :B, :in_dim].set(x_t)
    x_p = x_p.astype(matmul_dtype)

    # Stack + zero-pad per-layer weights; biases pre-summed (b_ih + b_hh) in f32.
    n_w = L if fused else 2 * L
    w_s = jnp.zeros((n_w, P, P), f32)
    b_s = jnp.zeros((L, 1, P), f32)
    for l, (w_ih, w_hh, b_ih, b_hh) in enumerate(rnn_params):
        fi = w_ih.shape[0]
        if fused:
            w_s = w_s.at[l, :fi, :hidden].set(w_ih.astype(f32))
            w_s = w_s.at[l, half:half + hidden, :hidden].set(w_hh.astype(f32))
        else:
            w_s = w_s.at[2 * l, :fi, :hidden].set(w_ih.astype(f32))
            w_s = w_s.at[2 * l + 1, :hidden, :hidden].set(w_hh.astype(f32))
        b_s = b_s.at[l, 0, :hidden].set((b_ih + b_hh).astype(f32))
    w_s = w_s.astype(matmul_dtype)

    wfc_p = (jnp.zeros((P, OUT_P), f32).at[:hidden, :n_out]
             .set(fc_w.astype(f32)).astype(matmul_dtype))
    bfc_p = jnp.zeros((1, OUT_P), f32).at[0, :n_out].set(fc_b.astype(f32))

    kernel = functools.partial(_rnn_fc_sigmoid_kernel, n_layers=L, seq_len=T,
                               fused=fused, needs_mask=needs_mask, half=half)

    out = pl.pallas_call(
        kernel,
        out_shape=jax.ShapeDtypeStruct((B_pad, OUT_P), f32),
        grid=(B_pad // tile_b, T_pad // t_chunk),
        in_specs=[
            pl.BlockSpec((t_chunk, tile_b, P), lambda i, t: (t, i, 0)),  # activations
            pl.BlockSpec((n_w, P, P), lambda i, t: (0, 0, 0)),           # RNN weights
            pl.BlockSpec((L, 1, P), lambda i, t: (0, 0, 0)),             # biases
            pl.BlockSpec((P, OUT_P), lambda i, t: (0, 0)),               # fc weight
            pl.BlockSpec((1, OUT_P), lambda i, t: (0, 0)),               # fc bias
        ],
        out_specs=pl.BlockSpec((tile_b, OUT_P), lambda i, t: (i, 0)),
        scratch_shapes=[pltpu.VMEM((L, tile_b, P), f32)],                # carried hidden
        compiler_params=pltpu.CompilerParams(
            dimension_semantics=("parallel", "arbitrary"),
        ),
    )(x_p, w_s, b_s, wfc_p, bfc_p)

    return out[:B, :n_out]


def baseline_rnn_reference(x, rnn_params, fc_w, fc_b):
    """Pure-JAX reference with full f32 matmul precision."""
    B, T, _ = x.shape
    hidden = fc_w.shape[0]
    hi = jax.lax.Precision.HIGHEST
    hs = [jnp.zeros((B, hidden), jnp.float32) for _ in rnn_params]
    for t in range(T):
        inp = x[:, t, :]
        for l, (w_ih, w_hh, b_ih, b_hh) in enumerate(rnn_params):
            pre = (jnp.dot(inp, w_ih, precision=hi)
                   + jnp.dot(hs[l], w_hh, precision=hi) + b_ih + b_hh)
            h = jnp.tanh(pre)
            hs[l] = h
            inp = h
    logits = jnp.dot(hs[-1], fc_w, precision=hi) + fc_b
    return jax.nn.sigmoid(logits)


def init_params(key, in_dim, hidden, n_layers, n_out, dtype=jnp.float32):
    """Deterministic init mirroring nn.RNN / nn.Linear defaults (uniform +/- 1/sqrt(fan))."""
    params = []
    bound = 1.0 / float(hidden) ** 0.5
    for l in range(n_layers):
        fan_in = in_dim if l == 0 else hidden
        key, k1, k2, k3, k4 = jax.random.split(key, 5)
        w_ih = jax.random.uniform(k1, (fan_in, hidden), dtype, -bound, bound)
        w_hh = jax.random.uniform(k2, (hidden, hidden), dtype, -bound, bound)
        b_ih = jax.random.uniform(k3, (hidden,), dtype, -bound, bound)
        b_hh = jax.random.uniform(k4, (hidden,), dtype, -bound, bound)
        params.append((w_ih, w_hh, b_ih, b_hh))
    key, k5, k6 = jax.random.split(key, 3)
    fc_w = jax.random.uniform(k5, (hidden, n_out), dtype, -bound, bound)
    fc_b = jax.random.uniform(k6, (n_out,), dtype, -bound, bound)
    return params, fc_w, fc_b


if __name__ == "__main__":
    key = jax.random.PRNGKey(0)

    # Spec config: node_channels=47, hidden_channels=64, 3 RNN layers, 1 output.
    node_channels, hidden_channels, rnn_layers, n_outputs = 47, 64, 3, 1
    batch, seq = 4, 8

    key, kx, kp = jax.random.split(key, 3)
    x = jax.random.normal(kx, (batch, seq, node_channels), dtype=jnp.float32)
    rnn_params, fc_w, fc_b = init_params(kp, node_channels, hidden_channels,
                                         rnn_layers, n_outputs)
    ref = baseline_rnn_reference(x, rnn_params, fc_w, fc_b)

    # 1) Optimized path: bf16 matmul operands, fused [x;h] @ [W_ih;W_hh] matmul.
    out = jax.block_until_ready(baseline_rnn_forward(x, rnn_params, fc_w, fc_b))
    assert out.shape == (batch, n_outputs)
    assert jnp.allclose(out, ref, atol=2e-2, rtol=2e-2), float(jnp.max(jnp.abs(out - ref)))

    # 2) f32-operand path, exercising the time-chunked grid + padded-timestep masking.
    x2 = x[:, :7, :]
    ref2 = baseline_rnn_reference(x2, rnn_params, fc_w, fc_b)
    out2 = jax.block_until_ready(
        baseline_rnn_forward(x2, rnn_params, fc_w, fc_b,
                             t_chunk_max=4, matmul_dtype=jnp.float32))
    assert jnp.allclose(out2, ref2, atol=2e-3, rtol=2e-3), float(jnp.max(jnp.abs(out2 - ref2)))

    # 3) Fallback two-matmul path (hidden > 64, so the lane-packing trick does not apply).
    key, kx3, kp3 = jax.random.split(key, 3)
    x3 = jax.random.normal(kx3, (3, 6, node_channels), dtype=jnp.float32)
    rnn_params3, fc_w3, fc_b3 = init_params(kp3, node_channels, 96, 2, n_outputs)
    ref3 = baseline_rnn_reference(x3, rnn_params3, fc_w3, fc_b3)
    out3 = jax.block_until_ready(baseline_rnn_forward(x3, rnn_params3, fc_w3, fc_b3))
    assert jnp.allclose(out3, ref3, atol=2e-2, rtol=2e-2), float(jnp.max(jnp.abs(out3 - ref3)))

    print("KERNEL_OK")
</pallas_src>

<mosaic_0001>
module attributes {stable_mosaic.version = 11 : i64} {
  func.func @_rnn_fc_sigmoid_kernel(%arg0: i32, %arg1: i32, %arg2: memref<8x16x128xbf16, #tpu.memory_space<vmem>>, %arg3: memref<3x128x128xbf16, #tpu.memory_space<vmem>>, %arg4: memref<3x1x128xf32, #tpu.memory_space<vmem>>, %arg5: memref<128x128xbf16, #tpu.memory_space<vmem>>, %arg6: memref<1x128xf32, #tpu.memory_space<vmem>>, %arg7: memref<16x128xf32, #tpu.memory_space<vmem>>, %arg8: memref<3x16x128xf32, #tpu.memory_space<vmem>>) attributes {dimension_semantics = [#tpu.dimension_semantics<parallel>, #tpu.dimension_semantics<arbitrary>], iteration_bounds = array<i64: 1, 1>, scalar_prefetch = 0 : i64, scratch_operands = 1 : i64, tpu.core_type = #tpu.core_type<tc>, window_params = [{transform_indices = @transform_0, window_bounds = array<i64: 8, 16, 128>}, {pipeline_mode = #tpu.pipeline_mode<synchronous>, transform_indices = @transform_1, window_bounds = array<i64: 3, 128, 128>}, {pipeline_mode = #tpu.pipeline_mode<synchronous>, transform_indices = @transform_2, window_bounds = array<i64: 3, 1, 128>}, {pipeline_mode = #tpu.pipeline_mode<synchronous>, transform_indices = @transform_3, window_bounds = array<i64: 128, 128>}, {pipeline_mode = #tpu.pipeline_mode<synchronous>, transform_indices = @transform_4, window_bounds = array<i64: 1, 128>}, {transform_indices = @transform_5, window_bounds = array<i64: 16, 128>}]} {
    %c0_i32 = arith.constant 0 : i32
    %0 = arith.cmpi eq, %arg1, %c0_i32 : i32
    %1 = arith.extui %0 : i1 to i32
    %c0_i32_0 = arith.constant 0 : i32
    %2 = arith.cmpi ne, %1, %c0_i32_0 : i32
    scf.if %2 {
      %cst_162 = arith.constant 0.000000e+00 : f32
      %257 = vector.broadcast %cst_162 : f32 to vector<3x16x128xf32>
      %c0_163 = arith.constant 0 : index
      %c0_164 = arith.constant 0 : index
      %c0_165 = arith.constant 0 : index
      %258 = vector.load %arg8[%c0_163, %c0_164, %c0_165] : memref<3x16x128xf32, #tpu.memory_space<vmem>>, vector<3x16x128xf32>
      tpu.vector_store %arg8[%c0_163, %c0_164, %c0_165], %257 {strides = array<i32>} : memref<3x16x128xf32, #tpu.memory_space<vmem>>, vector<3x16x128xf32>,
    } else {
    }
    %c0 = arith.constant 0 : index
    %c0_1 = arith.constant 0 : index
    %c0_2 = arith.constant 0 : index
    %3 = vector.load %arg4[%c0, %c0_1, %c0_2] : memref<3x1x128xf32, #tpu.memory_space<vmem>>, vector<1x1x128xf32>
    %4 = vector.shape_cast %3 : vector<1x1x128xf32> to vector<1x128xf32>
    %5 = vector.shape_cast %4 : vector<1x128xf32> to vector<1x128xf32>
    %6 = vector.broadcast %5 : vector<1x128xf32> to vector<16x128xf32>
    %c1 = arith.constant 1 : index
    %c0_3 = arith.constant 0 : index
    %c0_4 = arith.constant 0 : index
    %7 = vector.load %arg4[%c1, %c0_3, %c0_4] : memref<3x1x128xf32, #tpu.memory_space<vmem>>, vector<1x1x128xf32>
    %8 = vector.shape_cast %7 : vector<1x1x128xf32> to vector<1x128xf32>
    %9 = vector.shape_cast %8 : vector<1x128xf32> to vector<1x128xf32>
    %10 = vector.broadcast %9 : vector<1x128xf32> to vector<16x128xf32>
    %c2 = arith.constant 2 : index
    %c0_5 = arith.constant 0 : index
    %c0_6 = arith.constant 0 : index
    %11 = vector.load %arg4[%c2, %c0_5, %c0_6] : memref<3x1x128xf32, #tpu.memory_space<vmem>>, vector<1x1x128xf32>
    %12 = vector.shape_cast %11 : vector<1x1x128xf32> to vector<1x128xf32>
    %13 = vector.shape_cast %12 : vector<1x128xf32> to vector<1x128xf32>
    %14 = vector.broadcast %13 : vector<1x128xf32> to vector<16x128xf32>
    %c0_7 = arith.constant 0 : index
    %c0_8 = arith.constant 0 : index
    %c0_9 = arith.constant 0 : index
    %15 = vector.load %arg8[%c0_7, %c0_8, %c0_9] : memref<3x16x128xf32, #tpu.memory_space<vmem>>, vector<1x16x128xf32>
    %16 = vector.shape_cast %15 : vector<1x16x128xf32> to vector<16x128xf32>
    %c1_10 = arith.constant 1 : index
    %c0_11 = arith.constant 0 : index
    %c0_12 = arith.constant 0 : index
    %17 = vector.load %arg8[%c1_10, %c0_11, %c0_12] : memref<3x16x128xf32, #tpu.memory_space<vmem>>, vector<1x16x128xf32>
    %18 = vector.shape_cast %17 : vector<1x16x128xf32> to vector<16x128xf32>
    %c2_13 = arith.constant 2 : index
    %c0_14 = arith.constant 0 : index
    %c0_15 = arith.constant 0 : index
    %19 = vector.load %arg8[%c2_13, %c0_14, %c0_15] : memref<3x16x128xf32, #tpu.memory_space<vmem>>, vector<1x16x128xf32>
    %20 = vector.shape_cast %19 : vector<1x16x128xf32> to vector<16x128xf32>
    %c0_i32_16 = arith.constant 0 : i32
    %21 = arith.index_cast %c0_i32_16 : i32 to index
    %c0_17 = arith.constant 0 : index
    %c0_18 = arith.constant 0 : index
    %22 = vector.load %arg2[%21, %c0_17, %c0_18] : memref<8x16x128xbf16, #tpu.memory_space<vmem>>, vector<1x16x128xbf16>
    %23 = vector.shape_cast %22 : vector<1x16x128xbf16> to vector<16x128xbf16>
    %24 = arith.extf %23 : vector<16x128xbf16> to vector<16x128xf32>
    %c64_i32 = arith.constant 64 : i32
    %25 = tpu.dynamic_rotate %16 by %c64_i32 dim 1 : vector<16x128xf32>, i32 -> vector<16x128xf32>
    %26 = arith.addf %24, %25 : vector<16x128xf32>
    %27 = arith.truncf %26 : vector<16x128xf32> to vector<16x128xbf16>
    %c0_19 = arith.constant 0 : index
    %c0_20 = arith.constant 0 : index
    %c0_21 = arith.constant 0 : index
    %28 = vector.load %arg3[%c0_19, %c0_20, %c0_21] : memref<3x128x128xbf16, #tpu.memory_space<vmem>>, vector<1x128x128xbf16>
    %29 = vector.shape_cast %28 : vector<1x128x128xbf16> to vector<128x128xbf16>
    %cst = arith.constant dense<0.000000e+00> : vector<16x128xf32>
    %30 = tpu.matmul %27, %29, %cst {dimension_numbers = #tpu.dot_dimension_numbers<[1], [0], [0], [1], [0, 0, 1, 1], [], []>} : vector<16x128xbf16>, vector<128x128xbf16>, vector<16x128xf32> -> vector<16x128xf32>
    %31 = arith.addf %30, %6 : vector<16x128xf32>
    %32 = math.tanh %31 : vector<16x128xf32>
    %c64_i32_22 = arith.constant 64 : i32
    %33 = tpu.dynamic_rotate %18 by %c64_i32_22 dim 1 : vector<16x128xf32>, i32 -> vector<16x128xf32>
    %34 = arith.addf %32, %33 : vector<16x128xf32>
    %35 = arith.truncf %34 : vector<16x128xf32> to vector<16x128xbf16>
    %c1_23 = arith.constant 1 : index
    %c0_24 = arith.constant 0 : index
    %c0_25 = arith.constant 0 : index
    %36 = vector.load %arg3[%c1_23, %c0_24, %c0_25] : memref<3x128x128xbf16, #tpu.memory_space<vmem>>, vector<1x128x128xbf16>
    %37 = vector.shape_cast %36 : vector<1x128x128xbf16> to vector<128x128xbf16>
    %cst_26 = arith.constant dense<0.000000e+00> : vector<16x128xf32>
    %38 = tpu.matmul %35, %37, %cst_26 {dimension_numbers = #tpu.dot_dimension_numbers<[1], [0], [0], [1], [0, 0, 1, 1], [], []>} : vector<16x128xbf16>, vector<128x128xbf16>, vector<16x128xf32> -> vector<16x128xf32>
    %39 = arith.addf %38, %10 : vector<16x128xf32>
    %40 = math.tanh %39 : vector<16x128xf32>
    %c64_i32_27 = arith.constant 64 : i32
    %41 = tpu.dynamic_rotate %20 by %c64_i32_27 dim 1 : vector<16x128xf32>, i32 -> vector<16x128xf32>
    %42 = arith.addf %40, %41 : vector<16x128xf32>
    %43 = arith.truncf %42 : vector<16x128xf32> to vector<16x128xbf16>
    %c2_28 = arith.constant 2 : index
    %c0_29 = arith.constant 0 : index
    %c0_30 = arith.constant 0 : index
    %44 = vector.load %arg3[%c2_28, %c0_29, %c0_30] : memref<3x128x128xbf16, #tpu.memory_space<vmem>>, vector<1x128x128xbf16>
    %45 = vector.shape_cast %44 : vector<1x128x128xbf16> to vector<128x128xbf16>
    %cst_31 = arith.constant dense<0.000000e+00> : vector<16x128xf32>
    %46 = tpu.matmul %43, %45, %cst_31 {dimension_numbers = #tpu.dot_dimension_numbers<[1], [0], [0], [1], [0, 0, 1, 1], [], []>} : vector<16x128xbf16>, vector<128x128xbf16>, vector<16x128xf32> -> vector<16x128xf32>
    %47 = arith.addf %46, %14 : vector<16x128xf32>
    %48 = math.tanh %47 : vector<16x128xf32>
    %c1_i32 = arith.constant 1 : i32
    %49 = arith.index_cast %c1_i32 : i32 to index
    %c0_32 = arith.constant 0 : index
    %c0_33 = arith.constant 0 : index
    %50 = vector.load %arg2[%49, %c0_32, %c0_33] : memref<8x16x128xbf16, #tpu.memory_space<vmem>>, vector<1x16x128xbf16>
    %51 = vector.shape_cast %50 : vector<1x16x128xbf16> to vector<16x128xbf16>
    %52 = arith.extf %51 : vector<16x128xbf16> to vector<16x128xf32>
    %c64_i32_34 = arith.constant 64 : i32
    %53 = tpu.dynamic_rotate %32 by %c64_i32_34 dim 1 : vector<16x128xf32>, i32 -> vector<16x128xf32>
    %54 = arith.addf %52, %53 : vector<16x128xf32>
    %55 = arith.truncf %54 : vector<16x128xf32> to vector<16x128xbf16>
    %c0_35 = arith.constant 0 : index
    %c0_36 = arith.constant 0 : index
    %c0_37 = arith.constant 0 : index
    %56 = vector.load %arg3[%c0_35, %c0_36, %c0_37] : memref<3x128x128xbf16, #tpu.memory_space<vmem>>, vector<1x128x128xbf16>
    %57 = vector.shape_cast %56 : vector<1x128x128xbf16> to vector<128x128xbf16>
    %cst_38 = arith.constant dense<0.000000e+00> : vector<16x128xf32>
    %58 = tpu.matmul %55, %57, %cst_38 {dimension_numbers = #tpu.dot_dimension_numbers<[1], [0], [0], [1], [0, 0, 1, 1], [], []>} : vector<16x128xbf16>, vector<128x128xbf16>, vector<16x128xf32> -> vector<16x128xf32>
    %59 = arith.addf %58, %6 : vector<16x128xf32>
    %60 = math.tanh %59 : vector<16x128xf32>
    %c64_i32_39 = arith.constant 64 : i32
    %61 = tpu.dynamic_rotate %40 by %c64_i32_39 dim 1 : vector<16x128xf32>, i32 -> vector<16x128xf32>
    %62 = arith.addf %60, %61 : vector<16x128xf32>
    %63 = arith.truncf %62 : vector<16x128xf32> to vector<16x128xbf16>
    %c1_40 = arith.constant 1 : index
    %c0_41 = arith.constant 0 : index
    %c0_42 = arith.constant 0 : index
    %64 = vector.load %arg3[%c1_40, %c0_41, %c0_42] : memref<3x128x128xbf16, #tpu.memory_space<vmem>>, vector<1x128x128xbf16>
    %65 = vector.shape_cast %64 : vector<1x128x128xbf16> to vector<128x128xbf16>
    %cst_43 = arith.constant dense<0.000000e+00> : vector<16x128xf32>
    %66 = tpu.matmul %63, %65, %cst_43 {dimension_numbers = #tpu.dot_dimension_numbers<[1], [0], [0], [1], [0, 0, 1, 1], [], []>} : vector<16x128xbf16>, vector<128x128xbf16>, vector<16x128xf32> -> vector<16x128xf32>
    %67 = arith.addf %66, %10 : vector<16x128xf32>
    %68 = math.tanh %67 : vector<16x128xf32>
    %c64_i32_44 = arith.constant 64 : i32
    %69 = tpu.dynamic_rotate %48 by %c64_i32_44 dim 1 : vector<16x128xf32>, i32 -> vector<16x128xf32>
    %70 = arith.addf %68, %69 : vector<16x128xf32>
    %71 = arith.truncf %70 : vector<16x128xf32> to vector<16x128xbf16>
    %c2_45 = arith.constant 2 : index
    %c0_46 = arith.constant 0 : index
    %c0_47 = arith.constant 0 : index
    %72 = vector.load %arg3[%c2_45, %c0_46, %c0_47] : memref<3x128x128xbf16, #tpu.memory_space<vmem>>, vector<1x128x128xbf16>
    %73 = vector.shape_cast %72 : vector<1x128x128xbf16> to vector<128x128xbf16>
    %cst_48 = arith.constant dense<0.000000e+00> : vector<16x128xf32>
    %74 = tpu.matmul %71, %73, %cst_48 {dimension_numbers = #tpu.dot_dimension_numbers<[1], [0], [0], [1], [0, 0, 1, 1], [], []>} : vector<16x128xbf16>, vector<128x128xbf16>, vector<16x128xf32> -> vector<16x128xf32>
    %75 = arith.addf %74, %14 : vector<16x128xf32>
    %76 = math.tanh %75 : vector<16x128xf32>
    %c2_i32 = arith.constant 2 : i32
    %77 = arith.index_cast %c2_i32 : i32 to index
    %c0_49 = arith.constant 0 : index
    %c0_50 = arith.constant 0 : index
    %78 = vector.load %arg2[%77, %c0_49, %c0_50] : memref<8x16x128xbf16, #tpu.memory_space<vmem>>, vector<1x16x128xbf16>
    %79 = vector.shape_cast %78 : vector<1x16x128xbf16> to vector<16x128xbf16>
    %80 = arith.extf %79 : vector<16x128xbf16> to vector<16x128xf32>
    %c64_i32_51 = arith.constant 64 : i32
    %81 = tpu.dynamic_rotate %60 by %c64_i32_51 dim 1 : vector<16x128xf32>, i32 -> vector<16x128xf32>
    %82 = arith.addf %80, %81 : vector<16x128xf32>
    %83 = arith.truncf %82 : vector<16x128xf32> to vector<16x128xbf16>
    %c0_52 = arith.constant 0 : index
    %c0_53 = arith.constant 0 : index
    %c0_54 = arith.constant 0 : index
    %84 = vector.load %arg3[%c0_52, %c0_53, %c0_54] : memref<3x128x128xbf16, #tpu.memory_space<vmem>>, vector<1x128x128xbf16>
    %85 = vector.shape_cast %84 : vector<1x128x128xbf16> to vector<128x128xbf16>
    %cst_55 = arith.constant dense<0.000000e+00> : vector<16x128xf32>
    %86 = tpu.matmul %83, %85, %cst_55 {dimension_numbers = #tpu.dot_dimension_numbers<[1], [0], [0], [1], [0, 0, 1, 1], [], []>} : vector<16x128xbf16>, vector<128x128xbf16>, vector<16x128xf32> -> vector<16x128xf32>
    %87 = arith.addf %86, %6 : vector<16x128xf32>
    %88 = math.tanh %87 : vector<16x128xf32>
    %c64_i32_56 = arith.constant 64 : i32
    %89 = tpu.dynamic_rotate %68 by %c64_i32_56 dim 1 : vector<16x128xf32>, i32 -> vector<16x128xf32>
    %90 = arith.addf %88, %89 : vector<16x128xf32>
    %91 = arith.truncf %90 : vector<16x128xf32> to vector<16x128xbf16>
    %c1_57 = arith.constant 1 : index
    %c0_58 = arith.constant 0 : index
    %c0_59 = arith.constant 0 : index
    %92 = vector.load %arg3[%c1_57, %c0_58, %c0_59] : memref<3x128x128xbf16, #tpu.memory_space<vmem>>, vector<1x128x128xbf16>
    %93 = vector.shape_cast %92 : vector<1x128x128xbf16> to vector<128x128xbf16>
    %cst_60 = arith.constant dense<0.000000e+00> : vector<16x128xf32>
    %94 = tpu.matmul %91, %93, %cst_60 {dimension_numbers = #tpu.dot_dimension_numbers<[1], [0], [0], [1], [0, 0, 1, 1], [], []>} : vector<16x128xbf16>, vector<128x128xbf16>, vector<16x128xf32> -> vector<16x128xf32>
    %95 = arith.addf %94, %10 : vector<16x128xf32>
    %96 = math.tanh %95 : vector<16x128xf32>
    %c64_i32_61 = arith.constant 64 : i32
    %97 = tpu.dynamic_rotate %76 by %c64_i32_61 dim 1 : vector<16x128xf32>, i32 -> vector<16x128xf32>
    %98 = arith.addf %96, %97 : vector<16x128xf32>
    %99 = arith.truncf %98 : vector<16x128xf32> to vector<16x128xbf16>
    %c2_62 = arith.constant 2 : index
    %c0_63 = arith.constant 0 : index
    %c0_64 = arith.constant 0 : index
    %100 = vector.load %arg3[%c2_62, %c0_63, %c0_64] : memref<3x128x128xbf16, #tpu.memory_space<vmem>>, vector<1x128x128xbf16>
    %101 = vector.shape_cast %100 : vector<1x128x128xbf16> to vector<128x128xbf16>
    %cst_65 = arith.constant dense<0.000000e+00> : vector<16x128xf32>
    %102 = tpu.matmul %99, %101, %cst_65 {dimension_numbers = #tpu.dot_dimension_numbers<[1], [0], [0], [1], [0, 0, 1, 1], [], []>} : vector<16x128xbf16>, vector<128x128xbf16>, vector<16x128xf32> -> vector<16x128xf32>
    %103 = arith.addf %102, %14 : vector<16x128xf32>
    %104 = math.tanh %103 : vector<16x128xf32>
    %c3_i32 = arith.constant 3 : i32
    %105 = arith.index_cast %c3_i32 : i32 to index
    %c0_66 = arith.constant 0 : index
    %c0_67 = arith.constant 0 : index
    %106 = vector.load %arg2[%105, %c0_66, %c0_67] : memref<8x16x128xbf16, #tpu.memory_space<vmem>>, vector<1x16x128xbf16>
    %107 = vector.shape_cast %106 : vector<1x16x128xbf16> to vector<16x128xbf16>
    %108 = arith.extf %107 : vector<16x128xbf16> to vector<16x128xf32>
    %c64_i32_68 = arith.constant 64 : i32
    %109 = tpu.dynamic_rotate %88 by %c64_i32_68 dim 1 : vector<16x128xf32>, i32 -> vector<16x128xf32>
    %110 = arith.addf %108, %109 : vector<16x128xf32>
    %111 = arith.truncf %110 : vector<16x128xf32> to vector<16x128xbf16>
    %c0_69 = arith.constant 0 : index
    %c0_70 = arith.constant 0 : index
    %c0_71 = arith.constant 0 : index
    %112 = vector.load %arg3[%c0_69, %c0_70, %c0_71] : memref<3x128x128xbf16, #tpu.memory_space<vmem>>, vector<1x128x128xbf16>
    %113 = vector.shape_cast %112 : vector<1x128x128xbf16> to vector<128x128xbf16>
    %cst_72 = arith.constant dense<0.000000e+00> : vector<16x128xf32>
    %114 = tpu.matmul %111, %113, %cst_72 {dimension_numbers = #tpu.dot_dimension_numbers<[1], [0], [0], [1], [0, 0, 1, 1], [], []>} : vector<16x128xbf16>, vector<128x128xbf16>, vector<16x128xf32> -> vector<16x128xf32>
    %115 = arith.addf %114, %6 : vector<16x128xf32>
    %116 = math.tanh %115 : vector<16x128xf32>
    %c64_i32_73 = arith.constant 64 : i32
    %117 = tpu.dynamic_rotate %96 by %c64_i32_73 dim 1 : vector<16x128xf32>, i32 -> vector<16x128xf32>
    %118 = arith.addf %116, %117 : vector<16x128xf32>
    %119 = arith.truncf %118 : vector<16x128xf32> to vector<16x128xbf16>
    %c1_74 = arith.constant 1 : index
    %c0_75 = arith.constant 0 : index
    %c0_76 = arith.constant 0 : index
    %120 = vector.load %arg3[%c1_74, %c0_75, %c0_76] : memref<3x128x128xbf16, #tpu.memory_space<vmem>>, vector<1x128x128xbf16>
    %121 = vector.shape_cast %120 : vector<1x128x128xbf16> to vector<128x128xbf16>
    %cst_77 = arith.constant dense<0.000000e+00> : vector<16x128xf32>
    %122 = tpu.matmul %119, %121, %cst_77 {dimension_numbers = #tpu.dot_dimension_numbers<[1], [0], [0], [1], [0, 0, 1, 1], [], []>} : vector<16x128xbf16>, vector<128x128xbf16>, vector<16x128xf32> -> vector<16x128xf32>
    %123 = arith.addf %122, %10 : vector<16x128xf32>
    %124 = math.tanh %123 : vector<16x128xf32>
    %c64_i32_78 = arith.constant 64 : i32
    %125 = tpu.dynamic_rotate %104 by %c64_i32_78 dim 1 : vector<16x128xf32>, i32 -> vector<16x128xf32>
    %126 = arith.addf %124, %125 : vector<16x128xf32>
    %127 = arith.truncf %126 : vector<16x128xf32> to vector<16x128xbf16>
    %c2_79 = arith.constant 2 : index
    %c0_80 = arith.constant 0 : index
    %c0_81 = arith.constant 0 : index
    %128 = vector.load %arg3[%c2_79, %c0_80, %c0_81] : memref<3x128x128xbf16, #tpu.memory_space<vmem>>, vector<1x128x128xbf16>
    %129 = vector.shape_cast %128 : vector<1x128x128xbf16> to vector<128x128xbf16>
    %cst_82 = arith.constant dense<0.000000e+00> : vector<16x128xf32>
    %130 = tpu.matmul %127, %129, %cst_82 {dimension_numbers = #tpu.dot_dimension_numbers<[1], [0], [0], [1], [0, 0, 1, 1], [], []>} : vector<16x128xbf16>, vector<128x128xbf16>, vector<16x128xf32> -> vector<16x128xf32>
    %131 = arith.addf %130, %14 : vector<16x128xf32>
    %132 = math.tanh %131 : vector<16x128xf32>
    %c4_i32 = arith.constant 4 : i32
    %133 = arith.index_cast %c4_i32 : i32 to index
    %c0_83 = arith.constant 0 : index
    %c0_84 = arith.constant 0 : index
    %134 = vector.load %arg2[%133, %c0_83, %c0_84] : memref<8x16x128xbf16, #tpu.memory_space<vmem>>, vector<1x16x128xbf16>
    %135 = vector.shape_cast %134 : vector<1x16x128xbf16> to vector<16x128xbf16>
    %136 = arith.extf %135 : vector<16x128xbf16> to vector<16x128xf32>
    %c64_i32_85 = arith.constant 64 : i32
    %137 = tpu.dynamic_rotate %116 by %c64_i32_85 dim 1 : vector<16x128xf32>, i32 -> vector<16x128xf32>
    %138 = arith.addf %136, %137 : vector<16x128xf32>
    %139 = arith.truncf %138 : vector<16x128xf32> to vector<16x128xbf16>
    %c0_86 = arith.constant 0 : index
    %c0_87 = arith.constant 0 : index
    %c0_88 = arith.constant 0 : index
    %140 = vector.load %arg3[%c0_86, %c0_87, %c0_88] : memref<3x128x128xbf16, #tpu.memory_space<vmem>>, vector<1x128x128xbf16>
    %141 = vector.shape_cast %140 : vector<1x128x128xbf16> to vector<128x128xbf16>
    %cst_89 = arith.constant dense<0.000000e+00> : vector<16x128xf32>
    %142 = tpu.matmul %139, %141, %cst_89 {dimension_numbers = #tpu.dot_dimension_numbers<[1], [0], [0], [1], [0, 0, 1, 1], [], []>} : vector<16x128xbf16>, vector<128x128xbf16>, vector<16x128xf32> -> vector<16x128xf32>
    %143 = arith.addf %142, %6 : vector<16x128xf32>
    %144 = math.tanh %143 : vector<16x128xf32>
    %c64_i32_90 = arith.constant 64 : i32
    %145 = tpu.dynamic_rotate %124 by %c64_i32_90 dim 1 : vector<16x128xf32>, i32 -> vector<16x128xf32>
    %146 = arith.addf %144, %145 : vector<16x128xf32>
    %147 = arith.truncf %146 : vector<16x128xf32> to vector<16x128xbf16>
    %c1_91 = arith.constant 1 : index
    %c0_92 = arith.constant 0 : index
    %c0_93 = arith.constant 0 : index
    %148 = vector.load %arg3[%c1_91, %c0_92, %c0_93] : memref<3x128x128xbf16, #tpu.memory_space<vmem>>, vector<1x128x128xbf16>
    %149 = vector.shape_cast %148 : vector<1x128x128xbf16> to vector<128x128xbf16>
    %cst_94 = arith.constant dense<0.000000e+00> : vector<16x128xf32>
    %150 = tpu.matmul %147, %149, %cst_94 {dimension_numbers = #tpu.dot_dimension_numbers<[1], [0], [0], [1], [0, 0, 1, 1], [], []>} : vector<16x128xbf16>, vector<128x128xbf16>, vector<16x128xf32> -> vector<16x128xf32>
    %151 = arith.addf %150, %10 : vector<16x128xf32>
    %152 = math.tanh %151 : vector<16x128xf32>
    %c64_i32_95 = arith.constant 64 : i32
    %153 = tpu.dynamic_rotate %132 by %c64_i32_95 dim 1 : vector<16x128xf32>, i32 -> vector<16x128xf32>
    %154 = arith.addf %152, %153 : vector<16x128xf32>
    %155 = arith.truncf %154 : vector<16x128xf32> to vector<16x128xbf16>
    %c2_96 = arith.constant 2 : index
    %c0_97 = arith.constant 0 : index
    %c0_98 = arith.constant 0 : index
    %156 = vector.load %arg3[%c2_96, %c0_97, %c0_98] : memref<3x128x128xbf16, #tpu.memory_space<vmem>>, vector<1x128x128xbf16>
    %157 = vector.shape_cast %156 : vector<1x128x128xbf16> to vector<128x128xbf16>
    %cst_99 = arith.constant dense<0.000000e+00> : vector<16x128xf32>
    %158 = tpu.matmul %155, %157, %cst_99 {dimension_numbers = #tpu.dot_dimension_numbers<[1], [0], [0], [1], [0, 0, 1, 1], [], []>} : vector<16x128xbf16>, vector<128x128xbf16>, vector<16x128xf32> -> vector<16x128xf32>
    %159 = arith.addf %158, %14 : vector<16x128xf32>
    %160 = math.tanh %159 : vector<16x128xf32>
    %c5_i32 = arith.constant 5 : i32
    %161 = arith.index_cast %c5_i32 : i32 to index
    %c0_100 = arith.constant 0 : index
    %c0_101 = arith.constant 0 : index
    %162 = vector.load %arg2[%161, %c0_100, %c0_101] : memref<8x16x128xbf16, #tpu.memory_space<vmem>>, vector<1x16x128xbf16>
    %163 = vector.shape_cast %162 : vector<1x16x128xbf16> to vector<16x128xbf16>
    %164 = arith.extf %163 : vector<16x128xbf16> to vector<16x128xf32>
    %c64_i32_102 = arith.constant 64 : i32
    %165 = tpu.dynamic_rotate %144 by %c64_i32_102 dim 1 : vector<16x128xf32>, i32 -> vector<16x128xf32>
    %166 = arith.addf %164, %165 : vector<16x128xf32>
    %167 = arith.truncf %166 : vector<16x128xf32> to vector<16x128xbf16>
    %c0_103 = arith.constant 0 : index
    %c0_104 = arith.constant 0 : index
    %c0_105 = arith.constant 0 : index
    %168 = vector.load %arg3[%c0_103, %c0_104, %c0_105] : memref<3x128x128xbf16, #tpu.memory_space<vmem>>, vector<1x128x128xbf16>
    %169 = vector.shape_cast %168 : vector<1x128x128xbf16> to vector<128x128xbf16>
    %cst_106 = arith.constant dense<0.000000e+00> : vector<16x128xf32>
    %170 = tpu.matmul %167, %169, %cst_106 {dimension_numbers = #tpu.dot_dimension_numbers<[1], [0], [0], [1], [0, 0, 1, 1], [], []>} : vector<16x128xbf16>, vector<128x128xbf16>, vector<16x128xf32> -> vector<16x128xf32>
    %171 = arith.addf %170, %6 : vector<16x128xf32>
    %172 = math.tanh %171 : vector<16x128xf32>
    %c64_i32_107 = arith.constant 64 : i32
    %173 = tpu.dynamic_rotate %152 by %c64_i32_107 dim 1 : vector<16x128xf32>, i32 -> vector<16x128xf32>
    %174 = arith.addf %172, %173 : vector<16x128xf32>
    %175 = arith.truncf %174 : vector<16x128xf32> to vector<16x128xbf16>
    %c1_108 = arith.constant 1 : index
    %c0_109 = arith.constant 0 : index
    %c0_110 = arith.constant 0 : index
    %176 = vector.load %arg3[%c1_108, %c0_109, %c0_110] : memref<3x128x128xbf16, #tpu.memory_space<vmem>>, vector<1x128x128xbf16>
    %177 = vector.shape_cast %176 : vector<1x128x128xbf16> to vector<128x128xbf16>
    %cst_111 = arith.constant dense<0.000000e+00> : vector<16x128xf32>
    %178 = tpu.matmul %175, %177, %cst_111 {dimension_numbers = #tpu.dot_dimension_numbers<[1], [0], [0], [1], [0, 0, 1, 1], [], []>} : vector<16x128xbf16>, vector<128x128xbf16>, vector<16x128xf32> -> vector<16x128xf32>
    %179 = arith.addf %178, %10 : vector<16x128xf32>
    %180 = math.tanh %179 : vector<16x128xf32>
    %c64_i32_112 = arith.constant 64 : i32
    %181 = tpu.dynamic_rotate %160 by %c64_i32_112 dim 1 : vector<16x128xf32>, i32 -> vector<16x128xf32>
    %182 = arith.addf %180, %181 : vector<16x128xf32>
    %183 = arith.truncf %182 : vector<16x128xf32> to vector<16x128xbf16>
    %c2_113 = arith.constant 2 : index
    %c0_114 = arith.constant 0 : index
    %c0_115 = arith.constant 0 : index
    %184 = vector.load %arg3[%c2_113, %c0_114, %c0_115] : memref<3x128x128xbf16, #tpu.memory_space<vmem>>, vector<1x128x128xbf16>
    %185 = vector.shape_cast %184 : vector<1x128x128xbf16> to vector<128x128xbf16>
    %cst_116 = arith.constant dense<0.000000e+00> : vector<16x128xf32>
    %186 = tpu.matmul %183, %185, %cst_116 {dimension_numbers = #tpu.dot_dimension_numbers<[1], [0], [0], [1], [0, 0, 1, 1], [], []>} : vector<16x128xbf16>, vector<128x128xbf16>, vector<16x128xf32> -> vector<16x128xf32>
    %187 = arith.addf %186, %14 : vector<16x128xf32>
    %188 = math.tanh %187 : vector<16x128xf32>
    %c6_i32 = arith.constant 6 : i32
    %189 = arith.index_cast %c6_i32 : i32 to index
    %c0_117 = arith.constant 0 : index
    %c0_118 = arith.constant 0 : index
    %190 = vector.load %arg2[%189, %c0_117, %c0_118] : memref<8x16x128xbf16, #tpu.memory_space<vmem>>, vector<1x16x128xbf16>
    %191 = vector.shape_cast %190 : vector<1x16x128xbf16> to vector<16x128xbf16>
    %192 = arith.extf %191 : vector<16x128xbf16> to vector<16x128xf32>
    %c64_i32_119 = arith.constant 64 : i32
    %193 = tpu.dynamic_rotate %172 by %c64_i32_119 dim 1 : vector<16x128xf32>, i32 -> vector<16x128xf32>
    %194 = arith.addf %192, %193 : vector<16x128xf32>
    %195 = arith.truncf %194 : vector<16x128xf32> to vector<16x128xbf16>
    %c0_120 = arith.constant 0 : index
    %c0_121 = arith.constant 0 : index
    %c0_122 = arith.constant 0 : index
    %196 = vector.load %arg3[%c0_120, %c0_121, %c0_122] : memref<3x128x128xbf16, #tpu.memory_space<vmem>>, vector<1x128x128xbf16>
    %197 = vector.shape_cast %196 : vector<1x128x128xbf16> to vector<128x128xbf16>
    %cst_123 = arith.constant dense<0.000000e+00> : vector<16x128xf32>
    %198 = tpu.matmul %195, %197, %cst_123 {dimension_numbers = #tpu.dot_dimension_numbers<[1], [0], [0], [1], [0, 0, 1, 1], [], []>} : vector<16x128xbf16>, vector<128x128xbf16>, vector<16x128xf32> -> vector<16x128xf32>
    %199 = arith.addf %198, %6 : vector<16x128xf32>
    %200 = math.tanh %199 : vector<16x128xf32>
    %c64_i32_124 = arith.constant 64 : i32
    %201 = tpu.dynamic_rotate %180 by %c64_i32_124 dim 1 : vector<16x128xf32>, i32 -> vector<16x128xf32>
    %202 = arith.addf %200, %201 : vector<16x128xf32>
    %203 = arith.truncf %202 : vector<16x128xf32> to vector<16x128xbf16>
    %c1_125 = arith.constant 1 : index
    %c0_126 = arith.constant 0 : index
    %c0_127 = arith.constant 0 : index
    %204 = vector.load %arg3[%c1_125, %c0_126, %c0_127] : memref<3x128x128xbf16, #tpu.memory_space<vmem>>, vector<1x128x128xbf16>
    %205 = vector.shape_cast %204 : vector<1x128x128xbf16> to vector<128x128xbf16>
    %cst_128 = arith.constant dense<0.000000e+00> : vector<16x128xf32>
    %206 = tpu.matmul %203, %205, %cst_128 {dimension_numbers = #tpu.dot_dimension_numbers<[1], [0], [0], [1], [0, 0, 1, 1], [], []>} : vector<16x128xbf16>, vector<128x128xbf16>, vector<16x128xf32> -> vector<16x128xf32>
    %207 = arith.addf %206, %10 : vector<16x128xf32>
    %208 = math.tanh %207 : vector<16x128xf32>
    %c64_i32_129 = arith.constant 64 : i32
    %209 = tpu.dynamic_rotate %188 by %c64_i32_129 dim 1 : vector<16x128xf32>, i32 -> vector<16x128xf32>
    %210 = arith.addf %208, %209 : vector<16x128xf32>
    %211 = arith.truncf %210 : vector<16x128xf32> to vector<16x128xbf16>
    %c2_130 = arith.constant 2 : index
    %c0_131 = arith.constant 0 : index
    %c0_132 = arith.constant 0 : index
    %212 = vector.load %arg3[%c2_130, %c0_131, %c0_132] : memref<3x128x128xbf16, #tpu.memory_space<vmem>>, vector<1x128x128xbf16>
    %213 = vector.shape_cast %212 : vector<1x128x128xbf16> to vector<128x128xbf16>
    %cst_133 = arith.constant dense<0.000000e+00> : vector<16x128xf32>
    %214 = tpu.matmul %211, %213, %cst_133 {dimension_numbers = #tpu.dot_dimension_numbers<[1], [0], [0], [1], [0, 0, 1, 1], [], []>} : vector<16x128xbf16>, vector<128x128xbf16>, vector<16x128xf32> -> vector<16x128xf32>
    %215 = arith.addf %214, %14 : vector<16x128xf32>
    %216 = math.tanh %215 : vector<16x128xf32>
    %c7_i32 = arith.constant 7 : i32
    %217 = arith.index_cast %c7_i32 : i32 to index
    %c0_134 = arith.constant 0 : index
    %c0_135 = arith.constant 0 : index
    %218 = vector.load %arg2[%217, %c0_134, %c0_135] : memref<8x16x128xbf16, #tpu.memory_space<vmem>>, vector<1x16x128xbf16>
    %219 = vector.shape_cast %218 : vector<1x16x128xbf16> to vector<16x128xbf16>
    %220 = arith.extf %219 : vector<16x128xbf16> to vector<16x128xf32>
    %c64_i32_136 = arith.constant 64 : i32
    %221 = tpu.dynamic_rotate %200 by %c64_i32_136 dim 1 : vector<16x128xf32>, i32 -> vector<16x128xf32>
    %222 = arith.addf %220, %221 : vector<16x128xf32>
    %223 = arith.truncf %222 : vector<16x128xf32> to vector<16x128xbf16>
    %c0_137 = arith.constant 0 : index
    %c0_138 = arith.constant 0 : index
    %c0_139 = arith.constant 0 : index
    %224 = vector.load %arg3[%c0_137, %c0_138, %c0_139] : memref<3x128x128xbf16, #tpu.memory_space<vmem>>, vector<1x128x128xbf16>
    %225 = vector.shape_cast %224 : vector<1x128x128xbf16> to vector<128x128xbf16>
    %cst_140 = arith.constant dense<0.000000e+00> : vector<16x128xf32>
    %226 = tpu.matmul %223, %225, %cst_140 {dimension_numbers = #tpu.dot_dimension_numbers<[1], [0], [0], [1], [0, 0, 1, 1], [], []>} : vector<16x128xbf16>, vector<128x128xbf16>, vector<16x128xf32> -> vector<16x128xf32>
    %227 = arith.addf %226, %6 : vector<16x128xf32>
    %228 = math.tanh %227 : vector<16x128xf32>
    %c64_i32_141 = arith.constant 64 : i32
    %229 = tpu.dynamic_rotate %208 by %c64_i32_141 dim 1 : vector<16x128xf32>, i32 -> vector<16x128xf32>
    %230 = arith.addf %228, %229 : vector<16x128xf32>
    %231 = arith.truncf %230 : vector<16x128xf32> to vector<16x128xbf16>
    %c1_142 = arith.constant 1 : index
    %c0_143 = arith.constant 0 : index
    %c0_144 = arith.constant 0 : index
    %232 = vector.load %arg3[%c1_142, %c0_143, %c0_144] : memref<3x128x128xbf16, #tpu.memory_space<vmem>>, vector<1x128x128xbf16>
    %233 = vector.shape_cast %232 : vector<1x128x128xbf16> to vector<128x128xbf16>
    %cst_145 = arith.constant dense<0.000000e+00> : vector<16x128xf32>
    %234 = tpu.matmul %231, %233, %cst_145 {dimension_numbers = #tpu.dot_dimension_numbers<[1], [0], [0], [1], [0, 0, 1, 1], [], []>} : vector<16x128xbf16>, vector<128x128xbf16>, vector<16x128xf32> -> vector<16x128xf32>
    %235 = arith.addf %234, %10 : vector<16x128xf32>
    %236 = math.tanh %235 : vector<16x128xf32>
    %c64_i32_146 = arith.constant 64 : i32
    %237 = tpu.dynamic_rotate %216 by %c64_i32_146 dim 1 : vector<16x128xf32>, i32 -> vector<16x128xf32>
    %238 = arith.addf %236, %237 : vector<16x128xf32>
    %239 = arith.truncf %238 : vector<16x128xf32> to vector<16x128xbf16>
    %c2_147 = arith.constant 2 : index
    %c0_148 = arith.constant 0 : index
    %c0_149 = arith.constant 0 : index
    %240 = vector.load %arg3[%c2_147, %c0_148, %c0_149] : memref<3x128x128xbf16, #tpu.memory_space<vmem>>, vector<1x128x128xbf16>
    %241 = vector.shape_cast %240 : vector<1x128x128xbf16> to vector<128x128xbf16>
    %cst_150 = arith.constant dense<0.000000e+00> : vector<16x128xf32>
    %242 = tpu.matmul %239, %241, %cst_150 {dimension_numbers = #tpu.dot_dimension_numbers<[1], [0], [0], [1], [0, 0, 1, 1], [], []>} : vector<16x128xbf16>, vector<128x128xbf16>, vector<16x128xf32> -> vector<16x128xf32>
    %243 = arith.addf %242, %14 : vector<16x128xf32>
    %244 = math.tanh %243 : vector<16x128xf32>
    %c8_i32 = arith.constant 8 : i32
    %c0_151 = arith.constant 0 : index
    %c0_152 = arith.constant 0 : index
    %c0_153 = arith.constant 0 : index
    %245 = vector.load %arg8[%c0_151, %c0_152, %c0_153] : memref<3x16x128xf32, #tpu.memory_space<vmem>>, vector<1x16x128xf32>
    %246 = vector.shape_cast %245 : vector<1x16x128xf32> to vector<16x128xf32>
    %247 = vector.shape_cast %228 : vector<16x128xf32> to vector<1x16x128xf32>
    tpu.vector_store %arg8[%c0_151, %c0_152, %c0_153], %247 {strides = array<i32>} : memref<3x16x128xf32, #tpu.memory_space<vmem>>, vector<1x16x128xf32>,
    %c1_154 = arith.constant 1 : index
    %c0_155 = arith.constant 0 : index
    %c0_156 = arith.constant 0 : index
    %248 = vector.load %arg8[%c1_154, %c0_155, %c0_156] : memref<3x16x128xf32, #tpu.memory_space<vmem>>, vector<1x16x128xf32>
    %249 = vector.shape_cast %248 : vector<1x16x128xf32> to vector<16x128xf32>
    %250 = vector.shape_cast %236 : vector<16x128xf32> to vector<1x16x128xf32>
    tpu.vector_store %arg8[%c1_154, %c0_155, %c0_156], %250 {strides = array<i32>} : memref<3x16x128xf32, #tpu.memory_space<vmem>>, vector<1x16x128xf32>,
    %c2_157 = arith.constant 2 : index
    %c0_158 = arith.constant 0 : index
    %c0_159 = arith.constant 0 : index
    %251 = vector.load %arg8[%c2_157, %c0_158, %c0_159] : memref<3x16x128xf32, #tpu.memory_space<vmem>>, vector<1x16x128xf32>
    %252 = vector.shape_cast %251 : vector<1x16x128xf32> to vector<16x128xf32>
    %253 = vector.shape_cast %244 : vector<16x128xf32> to vector<1x16x128xf32>
    tpu.vector_store %arg8[%c2_157, %c0_158, %c0_159], %253 {strides = array<i32>} : memref<3x16x128xf32, #tpu.memory_space<vmem>>, vector<1x16x128xf32>,
    %c0_i32_160 = arith.constant 0 : i32
    %254 = arith.cmpi eq, %arg1, %c0_i32_160 : i32
    %255 = arith.extui %254 : i1 to i32
    %c0_i32_161 = arith.constant 0 : i32
    %256 = arith.cmpi ne, %255, %c0_i32_161 : i32
    scf.if %256 {
      %257 = arith.truncf %244 : vector<16x128xf32> to vector<16x128xbf16>
      %c0_162 = arith.constant 0 : index
      %c0_163 = arith.constant 0 : index
      %258 = vector.load %arg5[%c0_162, %c0_163] : memref<128x128xbf16, #tpu.memory_space<vmem>>, vector<128x128xbf16>
      %cst_164 = arith.constant dense<0.000000e+00> : vector<16x128xf32>
      %259 = tpu.matmul %257, %258, %cst_164 {dimension_numbers = #tpu.dot_dimension_numbers<[1], [0], [0], [1], [0, 0, 1, 1], [], []>} : vector<16x128xbf16>, vector<128x128xbf16>, vector<16x128xf32> -> vector<16x128xf32>
      %c0_165 = arith.constant 0 : index
      %c0_166 = arith.constant 0 : index
      %260 = vector.load %arg6[%c0_165, %c0_166] : memref<1x128xf32, #tpu.memory_space<vmem>>, vector<1x128xf32>
      %261 = vector.broadcast %260 : vector<1x128xf32> to vector<16x128xf32>
      %262 = arith.addf %259, %261 : vector<16x128xf32>
      %cst_167 = arith.constant 0.000000e+00 : f32
      %263 = vector.broadcast %cst_167 : f32 to vector<16x128xf32>
      %264 = arith.subf %263, %262 : vector<16x128xf32>
      %265 = math.exp %264 : vector<16x128xf32>
      %cst_168 = arith.constant 1.000000e+00 : f32
      %266 = vector.broadcast %cst_168 : f32 to vector<16x128xf32>
      %267 = arith.addf %266, %265 : vector<16x128xf32>
      %268 = tpu.reciprocal %267 {approx = true} : vector<16x128xf32> -> vector<16x128xf32>
      %c0_169 = arith.constant 0 : index
      %c0_170 = arith.constant 0 : index
      %269 = vector.load %arg7[%c0_169, %c0_170] : memref<16x128xf32, #tpu.memory_space<vmem>>, vector<16x128xf32>
      tpu.vector_store %arg7[%c0_169, %c0_170], %268 {strides = array<i32>} : memref<16x128xf32, #tpu.memory_space<vmem>>, vector<16x128xf32>,
    } else {
    }
    return
  }
  func.func @transform_0(%arg0: i32, %arg1: i32) -> (i32, i32, i32) {
    %c0_i32 = arith.constant 0 : i32
    %c0_i32_0 = arith.constant 0 : i32
    return %arg1, %arg0, %c0_i32 : i32, i32, i32
  }
  func.func @transform_1(%arg0: i32, %arg1: i32) -> (i32, i32, i32) {
    %c0_i32 = arith.constant 0 : i32
    %c0_i32_0 = arith.constant 0 : i32
    %c0_i32_1 = arith.constant 0 : i32
    %c0_i32_2 = arith.constant 0 : i32
    return %c0_i32, %c0_i32_0, %c0_i32_1 : i32, i32, i32
  }
  func.func @transform_2(%arg0: i32, %arg1: i32) -> (i32, i32, i32) {
    %c0_i32 = arith.constant 0 : i32
    %c0_i32_0 = arith.constant 0 : i32
    %c0_i32_1 = arith.constant 0 : i32
    %c0_i32_2 = arith.constant 0 : i32
    return %c0_i32, %c0_i32_0, %c0_i32_1 : i32, i32, i32
  }
  func.func @transform_3(%arg0: i32, %arg1: i32) -> (i32, i32) {
    %c0_i32 = arith.constant 0 : i32
    %c0_i32_0 = arith.constant 0 : i32
    %c0_i32_1 = arith.constant 0 : i32
    return %c0_i32, %c0_i32_0 : i32, i32
  }
  func.func @transform_4(%arg0: i32, %arg1: i32) -> (i32, i32) {
    %c0_i32 = arith.constant 0 : i32
    %c0_i32_0 = arith.constant 0 : i32
    %c0_i32_1 = arith.constant 0 : i32
    return %c0_i32, %c0_i32_0 : i32, i32
  }
  func.func @transform_5(%arg0: i32, %arg1: i32) -> (i32, i32) {
    %c0_i32 = arith.constant 0 : i32
    %c0_i32_0 = arith.constant 0 : i32
    return %arg0, %c0_i32 : i32, i32
  }
}

</mosaic_0001>

<bundles_post_ra>
// kernel: tpu_custom_call.1
= control target key start
LH: loop header
LB: loop body
LE: loop exit
PB: predicated region body
PF: predicated region fallthrough
CT: control target
= control target key end

     0   :  { %10 = vsyncpa [#allocation4], 0  ;;  %s3543_s0 = inlined_call_operand.hbm [shape: bf16[8,16,128], index: 0, kind: input, shape index: {}]   ;;  %s3544_s1 = inlined_call_operand.hbm [shape: bf16[3,128,128], index: 1, kind: input, shape index: {}]   ;;  %s3545_s2 = inlined_call_operand.vmem [shape: f32[3,1,128], index: 2, kind: input, shape index: {}]   ;;  %s3546_s3 = inlined_call_operand.hbm [shape: bf16[128,128], index: 3, kind: input, shape index: {}]   ;;  %s3547_s4 = inlined_call_operand.vmem [shape: f32[1,128], index: 4, kind: input, shape index: {}]   ;;  %s3548_s5 = inlined_call_operand.hbm [shape: f32[16,128], index: 5, kind: output, shape index: {}]  }
   0x1   :  { %11 = vsyncpa [#allocation7], 0 }
   0x2   :  { %12 = vsyncpa [#allocation5], 0  ;;  %s2772_s18 = smov [#allocation6]   ;;  %s2773_s20 = smov [#allocation3]  }
   0x3   :  { %s30_s19 = sshll.u32 %s2772_s18, 4  ;;  %s18_s21 = sshll.u32 %s2773_s20, 4  ;;  %s31_s19 = int_to_ptr.vmem [resolvable:$true] %s30_s19  ;;  %s2812_s21 = int_to_ptr.vmem [resolvable:$true] %s18_s21 }
   0x4   :  { %s2678_s24 = scalar_lea.hbm %s3544_s1, 3072 }
   0x5   :  { %p2679_p0 = scmp.ne.s32.totalorder %s3544_s1, %s2678_s24  ;;  %p2682_p1 = scmp.lt.u32.totalorder %s2678_s24, %s3544_s1 }
   0x7   :  { %p2684_p2 = pnand %p2682_p1, %p2679_p0 }
   0x9   :  { %2687 = shalt.err (!%p2684_p2)
}
   0xa   :  { %s2688_s29 = scalar_lea.vmem %s31_s19, 3072  ;;  %p2693_p4 = scmp.lt.s32.totalorder %s31_s19, %s31_s19 }
   0xb   :  { %p2689_p3 = scmp.ne.s32.totalorder %s31_s19, %s2688_s29  ;;  %p2694_p5 = scmp.lt.s32.totalorder %s2688_s29, %s2688_s29 }
   0xd   :  { %p2695_p6 = por %p2694_p5, %p2693_p4 }
   0xf   :  { %p2696_p7 = pnand %p2695_p6, %p2689_p3 }
  0x11   :  { %2699 = shalt.err (!%p2696_p7)
}
  0x12   :  { %s2774_s30 = smov 64   ;;  %s2775_s6 = smov 4  }
  0x13   :  { %36 = dma.hbm_to_vmem [thread:$0]  %s3544_s1, 3072, %s31_s19, [#allocation7], %s2774_s30, %s2774_s30, %s2775_s6  }
  0x14   :  { %s2700_s11 = scalar_lea.hbm %s3543_s0, 1024 }
  0x15   :  { %p2701_p8 = scmp.ne.s32.totalorder %s3543_s0, %s2700_s11  ;;  %p2704_p9 = scmp.lt.u32.totalorder %s2700_s11, %s3543_s0 }
  0x17   :  { %p2706_p10 = pnand %p2704_p9, %p2701_p8 }
  0x19   :  { %2709 = shalt.err (!%p2706_p10)
}
  0x1a   :  { %s2710_s16 = scalar_lea.vmem %s2812_s21, 1024  ;;  %p2715_p12 = scmp.lt.s32.totalorder %s2812_s21, %s2812_s21 }
  0x1b   :  { %p2711_p11 = scmp.ne.s32.totalorder %s2812_s21, %s2710_s16  ;;  %p2716_p13 = scmp.lt.s32.totalorder %s2710_s16, %s2710_s16 }
  0x1d   :  { %p2717_p0 = por %p2716_p13, %p2715_p12 }
  0x1f   :  { %p2718_p1 = pnand %p2717_p0, %p2711_p11 }
  0x21   :  { %2721 = shalt.err (!%p2718_p1)
}
  0x22   :  { %24 = dma.hbm_to_vmem [thread:$0]  %s3543_s0, 1024, %s2812_s21, [#allocation4], %s2774_s30, %s2774_s30, %s2775_s6  }
  0x23   :  { %s2776_s18 = smov [#allocation8]   ;;  %s2722_s23 = scalar_lea.hbm %s3546_s3, 1024 }
  0x24   :  { %s44_s19 = sshll.u32 %s2776_s18, 4  ;;  %p2723_p2 = scmp.ne.s32.totalorder %s3546_s3, %s2722_s23  ;;  %s45_s19 = int_to_ptr.vmem [resolvable:$true] %s44_s19 }
  0x25   :  { %p2726_p3 = scmp.lt.u32.totalorder %s2722_s23, %s3546_s3 }
  0x27   :  { %p2728_p4 = pnand %p2726_p3, %p2723_p2 }
  0x29   :  { %2731 = shalt.err (!%p2728_p4)
}
  0x2a   :  { %s2732_s28 = scalar_lea.vmem %s45_s19, 1024  ;;  %p2737_p6 = scmp.lt.s32.totalorder %s45_s19, %s45_s19 }
  0x2b   :  { %p2733_p5 = scmp.ne.s32.totalorder %s45_s19, %s2732_s28  ;;  %p2738_p7 = scmp.lt.s32.totalorder %s2732_s28, %s2732_s28 }
  0x2d   :  { %p2739_p8 = por %p2738_p7, %p2737_p6 }
  0x2f   :  { %p2740_p9 = pnand %p2739_p8, %p2733_p5 }
  0x31   :  { %2743 = shalt.err (!%p2740_p9)
}
  0x32   :  { %50 = dma.hbm_to_vmem [thread:$0]  %s3546_s3, 1024, %s45_s19, [#allocation7], %s2774_s30, %s2774_s30, %s2775_s6  }
  0x33   :  { %2766 = dma.done.wait [#allocation4], 1024  }
  0x34   :  { %2767 = vsyncadd [#allocation4], 4294966272 }
  0x35   :  { %2768 = dma.done.wait [#allocation7], 4096  }
  0x36   :  { %2769 = vsyncadd [#allocation7], 4294963200  ;;  %v2777_v0 = vmov 0.0   ;;  %vm2778_vm0 = vmmov 0   ;;  %v2872_v1 = vld [vmem:[#allocation6] sm:$0xff]   ;;  %v2877_v2 = vld [vmem:[#allocation6 + $0x8] sm:$0xff]  }
  0x37   :  { %1984 = vmatprep.subr.bf16.mxu0 %v2777_v0  ;;  %2000 = vmatprep.mubr.msk.bf16.mxu0 %vm2778_vm0, %v2777_v0  ;;  %v2881_v3 = vld [vmem:[#allocation6 + $0x10] sm:$0xff]   ;;  %v2884_v4 = vld [vmem:[#allocation6 + $0x40] sm:$0xff]   ;;  %v2887_v5 = vld [vmem:[#allocation6 + $0x18] sm:$0xff]   ;;  %s2779_s16 = smov [#allocation9]  }
  0x38   :  { %2004 = vmatprep.subr.bf16.mxu1 %v2777_v0  ;;  %2020 = vmatprep.mubr.msk.bf16.mxu1 %vm2778_vm0, %v2777_v0  ;;  %v2891_v6 = vld [vmem:[#allocation6 + $0x48] sm:$0xff]   ;;  %v2893_v7 = vld [vmem:[#allocation6 + $0x20] sm:$0xff]   ;;  %v2896_v8 = vld [vmem:[#allocation6 + $0x50] sm:$0xff]  }
  0x39   :  { %2495 = vrot.lane.b32.xlu0 %v2777_v0, %s2774_s30  ;;  %1985 = vmatpush3.bf16.msra.mxu0 %v2872_v1  ;;  %v2901_v9 = vld [vmem:[#allocation6 + $0x28] sm:$0xff]   ;;  %v2907_v10 = vld [vmem:[#allocation6 + $0x30] sm:$0xff]   ;;  %v2913_v11 = vld [vmem:[#allocation6 + $0x38] sm:$0xff]  }
  0x3a   :  { %1986 = vmatprep.subr.bf16.mxu0 %v2777_v0  ;;  %2005 = vmatpush3.bf16.msra.mxu1 %v2884_v4  ;;  %v1728_v12 = vld [vmem:[#allocation3] sm:$0xff]   ;;  %v2920_v19 = vld [vmem:[#allocation6 + $0x58] sm:$0xff]   ;;  %v2927_v21 = vld [vmem:[#allocation6 + $0x68] sm:$0xff]  }
  0x3b   :  { %2006 = vmatprep.subr.bf16.mxu1 %v2777_v0  ;;  %v1729_v13 = vunpack.c.l.bf16 %v1728_v12  ;;  %v1730_v14 = vunpack.c.h.bf16 %v1728_v12  ;;  %v2924_v20 = vld [vmem:[#allocation6 + $0x60] sm:$0xff]   ;;  %v2932_v22 = vld [vmem:[#allocation6 + $0x70] sm:$0xff]   ;;  %v2936_v23 = vld [vmem:[#allocation6 + $0x78] sm:$0xff]  }
  0x3c   :  { %v2945_v24 = vld [vmem:[%s3545_s2] ss:$0 sm:$0xff]  ;;  %v2952_v33 = vld [vmem:[#allocation6 + $0x88] sm:$0xff]   ;;  %v2957_v36 = vld [vmem:[#allocation6 + $0x90] sm:$0xff]  }
  0x3d   :  { %2500 = vrot.lane.b32.xlu0 %v2777_v0, %s2774_s30  ;;  %1987 = vmatpush3.bf16.msra.mxu0 %v2877_v2  ;;  %v2949_v32 = vld [vmem:[#allocation6 + $0x80] sm:$0xff]   ;;  %v2981_v40 = vld [vmem:[#allocation6 + $0x98] sm:$0xff]   ;;  %v2988_v42 = vld [vmem:[#allocation6 + $0xa8] sm:$0xff]  }
  0x3e   :  { %1988 = vmatprep.subr.bf16.mxu0 %v2777_v0  ;;  %2007 = vmatpush3.bf16.msra.mxu1 %v2891_v6  ;;  %v2985_v41 = vld [vmem:[#allocation6 + $0xa0] sm:$0xff]   ;;  %v2993_v43 = vld [vmem:[#allocation6 + $0xb0] sm:$0xff]   ;;  %v2997_v44 = vld [vmem:[#allocation6 + $0xb8] sm:$0xff]  }
  0x3f   :  { %2008 = vmatprep.subr.bf16.mxu1 %v2777_v0  ;;  %v1732_v45 = vld [vmem:[#allocation3 + $0x8] sm:$0xff]   ;;  %v3022_v53 = vld [vmem:[%s3545_s2 + $0x1] ss:$0 sm:$0xff] }
  0x40   :  { %v1733_v47 = vunpack.c.l.bf16 %v1732_v45  ;;  %v1734_v48 = vunpack.c.h.bf16 %v1732_v45 }
  0x41   :  { %1989 = vmatpush3.bf16.msra.mxu0 %v2881_v3  ;;  %2505 = vrot.lane.b32.xlu0 %v2777_v0, %s2774_s30 }
  0x42   :  { %1990 = vmatprep.subr.bf16.mxu0 %v2777_v0  ;;  %2009 = vmatpush3.bf16.msra.mxu1 %v2896_v8 }
  0x43   :  { %2010 = vmatprep.subr.bf16.mxu1 %v2777_v0 }
  0x45   :  { %1991 = vmatpush3.bf16.msra.mxu0 %v2887_v5 }
  0x46   :  { %1992 = vmatprep.subr.bf16.mxu0 %v2777_v0  ;;  %2011 = vmatpush3.bf16.msra.mxu1 %v2920_v19 }
  0x47   :  { %2012 = vmatprep.subr.bf16.mxu1 %v2777_v0 }
  0x49   :  { %1993 = vmatpush3.bf16.msra.mxu0 %v2893_v7 }
  0x4a   :  { %1994 = vmatprep.subr.bf16.mxu0 %v2777_v0  ;;  %2013 = vmatpush3.bf16.msra.mxu1 %v2924_v20 }
  0x4b   :  { %2014 = vmatprep.subr.bf16.mxu1 %v2777_v0 }
  0x4d   :  { %1995 = vmatpush3.bf16.msra.mxu0 %v2901_v9 }
  0x4e   :  { %1996 = vmatprep.subr.bf16.mxu0 %v2777_v0  ;;  %2015 = vmatpush3.bf16.msra.mxu1 %v2927_v21 }
  0x4f   :  { %2016 = vmatprep.subr.bf16.mxu1 %v2777_v0 }
  0x51   :  { %1997 = vmatpush3.bf16.msra.mxu0 %v2907_v10 }
  0x52   :  { %1998 = vmatprep.subr.bf16.mxu0 %v2777_v0  ;;  %2017 = vmatpush3.bf16.msra.mxu1 %v2932_v22 }
  0x53   :  { %2018 = vmatprep.subr.bf16.mxu1 %v2777_v0 }
  0x55   :  { %1999 = vmatpush3.bf16.msra.mxu0 %v2913_v11 }
  0x56   :  { %2024 = vmatprep.subr.bf16.mxu0 %v2777_v0  ;;  %2019 = vmatpush3.bf16.msra.mxu1 %v2936_v23 }
  0x57   :  { %2044 = vmatprep.subr.bf16.mxu1 %v2777_v0 }
  0xab   :  { %v2496_v15 = vpop.permute.xlu0 %2495 }
  0xac   :  { %v2672_v16 = vadd.low.f32.bf16 %v1729_v13, %v2496_v15  ;;  %v2673_v17 = vadd.high.f32.bf16 %v1730_v14, %v2496_v15 }
  0xae   :  { %v114_v18 = vpack.c.bf16 %v2673_v17, %v2672_v16 }
  0xaf   :  { %v2501_v31 = vpop.permute.xlu0 %2500 }
  0xb0   :  { %2001 = vmatmul.mubr.bf16.vlgmr.msra.gmra.mrb[0].mxu0 %v114_v18 }
  0xb1   :  { %2040 = vmatprep.mubr.msk.bf16.mxu0 %vm2778_vm0, %v2777_v0  ;;  %2025 = vmatpush3.bf16.msra.mxu0 %v2949_v32 }
  0xb2   :  { %2026 = vmatprep.subr.bf16.mxu0 %v2777_v0 }
  0xb3   :  { %v2506_v60 = vpop.permute.xlu0 %2505 }
  0xb5   :  { %2027 = vmatpush3.bf16.msra.mxu0 %v2952_v33 }
  0xb6   :  { %2028 = vmatprep.subr.bf16.mxu0 %v2777_v0 }
  0xb9   :  { %2029 = vmatpush3.bf16.msra.mxu0 %v2957_v36 }
  0xba   :  { %2030 = vmatprep.subr.bf16.mxu0 %v2777_v0 }
  0xbd   :  { %2031 = vmatpush3.bf16.msra.mxu0 %v2981_v40 }
  0xbe   :  { %2032 = vmatprep.subr.bf16.mxu0 %v2777_v0 }
  0xc1   :  { %2033 = vmatpush3.bf16.msra.mxu0 %v2985_v41 }
  0xc2   :  { %2034 = vmatprep.subr.bf16.mxu0 %v2777_v0 }
  0xc5   :  { %2035 = vmatpush3.bf16.msra.mxu0 %v2988_v42 }
  0xc6   :  { %2036 = vmatprep.subr.bf16.mxu0 %v2777_v0 }
  0xc9   :  { %2037 = vmatpush3.bf16.msra.mxu0 %v2993_v43 }
  0xca   :  { %2038 = vmatprep.subr.bf16.mxu0 %v2777_v0 }
  0xcd   :  { %2039 = vmatpush3.bf16.msra.mxu0 %v2997_v44 }
  0xce   :  { %2064 = vmatprep.subr.bf16.mxu0 %v2777_v0 }
 0x183   :  { %v213_v25 = vpop.f32.mrb[0].mxu0 }
 0x184   :  { %v214_v26 = vadd.f32 %v2945_v24, %v213_v25  ;;  %v2002_v27 = vpop.f32.mrb[1].mxu0 }
 0x185   :  { %v216_v28 = vpop.f32.mrb[2].mxu0 }
 0x186   :  { %2541 = vtanh.f32 %v214_v26  ;;  %v217_v29 = vadd.f32 %v2945_v24, %v216_v28  ;;  %v2003_v30 = vpop.f32.mrb[3].mxu0 }
 0x188   :  { %2543 = vtanh.f32 %v217_v29 }
 0x190   :  { %v2542_v34 = vpop.eup %2541 }
 0x191   :  { %457 = vrot.lane.b32.xlu1 %v2542_v34, %s2774_s30  ;;  %v2674_v37 = vadd.low.f32.bf16 %v2542_v34, %v2501_v31 }
 0x192   :  { %v2544_v35 = vpop.eup %2543 }
 0x193   :  { %v2675_v38 = vadd.high.f32.bf16 %v2544_v35, %v2501_v31 }
 0x195   :  { %459 = vrot.lane.b32.xlu1 %v2544_v35, %s2774_s30  ;;  %v228_v39 = vpack.c.bf16 %v2675_v38, %v2674_v37  ;;  %v3071_v35 = vld [vmem:[%s3545_s2 + $0x2] ss:$0 sm:$0xff] }
 0x197   :  { %2021 = vmatmul.mubr.bf16.vlgmr.msra.gmra.mrb[0].mxu1 %v228_v39 }
 0x198   :  { %2045 = vmatpush3.bf16.msra.mxu1 %v2872_v1  ;;  %2060 = vmatprep.mubr.msk.bf16.mxu1 %vm2778_vm0, %v2777_v0 }
 0x199   :  { %2046 = vmatprep.subr.bf16.mxu1 %v2777_v0 }
 0x19c   :  { %2047 = vmatpush3.bf16.msra.mxu1 %v2877_v2 }
 0x19d   :  { %2048 = vmatprep.subr.bf16.mxu1 %v2777_v0 }
 0x1a0   :  { %2049 = vmatpush3.bf16.msra.mxu1 %v2881_v3 }
 0x1a1   :  { %2050 = vmatprep.subr.bf16.mxu1 %v2777_v0 }
 0x1a4   :  { %2051 = vmatpush3.bf16.msra.mxu1 %v2887_v5 }
 0x1a5   :  { %2052 = vmatprep.subr.bf16.mxu1 %v2777_v0 }
 0x1a8   :  { %2053 = vmatpush3.bf16.msra.mxu1 %v2893_v7 }
 0x1a9   :  { %2054 = vmatprep.subr.bf16.mxu1 %v2777_v0 }
 0x1ac   :  { %2055 = vmatpush3.bf16.msra.mxu1 %v2901_v9 }
 0x1ad   :  { %2056 = vmatprep.subr.bf16.mxu1 %v2777_v0 }
 0x1b0   :  { %2057 = vmatpush3.bf16.msra.mxu1 %v2907_v10 }
 0x1b1   :  { %2058 = vmatprep.subr.bf16.mxu1 %v2777_v0 }
 0x1b4   :  { %2059 = vmatpush3.bf16.msra.mxu1 %v2913_v11 }
 0x1b5   :  { %2084 = vmatprep.subr.bf16.mxu1 %v2777_v0 }
 0x203   :  { %v458_v46 = vpop.permute.xlu1 %457 }
 0x204   :  { %v461_v50 = vadd.f32 %v1733_v47, %v458_v46 }
 0x207   :  { %v460_v49 = vpop.permute.xlu1 %459 }
 0x208   :  { %v462_v51 = vadd.f32 %v1734_v48, %v460_v49  ;;  %v1736_v48 = vld [vmem:[#allocation3 + $0x10] sm:$0xff]  }
 0x20a   :  { %v463_v52 = vpack.c.bf16 %v462_v51, %v461_v50  ;;  %v1737_v50 = vunpack.c.l.bf16 %v1736_v48  ;;  %v1738_v51 = vunpack.c.h.bf16 %v1736_v48 }
 0x20c   :  { %2061 = vmatmul.mubr.bf16.vlgmr.msra.gmra.mrb[4].mxu1 %v463_v52 }
 0x20d   :  { %2085 = vmatpush3.bf16.msra.mxu1 %v2949_v32  ;;  %2100 = vmatprep.mubr.msk.bf16.mxu1 %vm2778_vm0, %v2777_v0 }
 0x20e   :  { %2086 = vmatprep.subr.bf16.mxu1 %v2777_v0 }
 0x211   :  { %2087 = vmatpush3.bf16.msra.mxu1 %v2952_v33 }
 0x212   :  { %2088 = vmatprep.subr.bf16.mxu1 %v2777_v0 }
 0x215   :  { %2089 = vmatpush3.bf16.msra.mxu1 %v2957_v36 }
 0x216   :  { %2090 = vmatprep.subr.bf16.mxu1 %v2777_v0 }
 0x219   :  { %2091 = vmatpush3.bf16.msra.mxu1 %v2981_v40 }
 0x21a   :  { %2092 = vmatprep.subr.bf16.mxu1 %v2777_v0 }
 0x21d   :  { %2093 = vmatpush3.bf16.msra.mxu1 %v2985_v41 }
 0x21e   :  { %2094 = vmatprep.subr.bf16.mxu1 %v2777_v0 }
 0x221   :  { %2095 = vmatpush3.bf16.msra.mxu1 %v2988_v42 }
 0x222   :  { %2096 = vmatprep.subr.bf16.mxu1 %v2777_v0 }
 0x225   :  { %2097 = vmatpush3.bf16.msra.mxu1 %v2993_v43 }
 0x226   :  { %2098 = vmatprep.subr.bf16.mxu1 %v2777_v0 }
 0x229   :  { %2099 = vmatpush3.bf16.msra.mxu1 %v2997_v44 }
 0x22a   :  { %2124 = vmatprep.subr.bf16.mxu1 %v2777_v0 }
 0x26a   :  { %v328_v54 = vpop.f32.mrb[0].mxu1 }
 0x26b   :  { %v329_v55 = vadd.f32 %v3022_v53, %v328_v54  ;;  %v2022_v56 = vpop.f32.mrb[1].mxu1 }
 0x26c   :  { %v331_v57 = vpop.f32.mrb[2].mxu1 }
 0x26d   :  { %2545 = vtanh.f32 %v329_v55  ;;  %v332_v58 = vadd.f32 %v3022_v53, %v331_v57  ;;  %v2023_v59 = vpop.f32.mrb[3].mxu1 }
 0x26f   :  { %2547 = vtanh.f32 %v332_v58 }
 0x277   :  { %v2546_v61 = vpop.eup %2545 }
 0x278   :  { %507 = vrot.lane.b32.xlu1 %v2546_v61, %s2774_s30  ;;  %v2676_v63 = vadd.low.f32.bf16 %v2546_v61, %v2506_v60 }
 0x279   :  { %v2548_v62 = vpop.eup %2547 }
 0x27a   :  { %v2677_v12 = vadd.high.f32.bf16 %v2548_v62, %v2506_v60  ;;  %509 = vrot.lane.b32.xlu0 %v2548_v62, %s2774_s30 }
 0x27c   :  { %v343_v13 = vpack.c.bf16 %v2677_v12, %v2676_v63 }
 0x27e   :  { %2041 = vmatmul.mubr.bf16.vlgmr.msra.gmra.mrb[4].mxu0 %v343_v13 }
 0x27f   :  { %2065 = vmatpush3.bf16.msra.mxu0 %v2884_v4  ;;  %2080 = vmatprep.mubr.msk.bf16.mxu0 %vm2778_vm0, %v2777_v0 }
 0x280   :  { %2066 = vmatprep.subr.bf16.mxu0 %v2777_v0 }
 0x283   :  { %2067 = vmatpush3.bf16.msra.mxu0 %v2891_v6 }
 0x284   :  { %2068 = vmatprep.subr.bf16.mxu0 %v2777_v0 }
 0x287   :  { %2069 = vmatpush3.bf16.msra.mxu0 %v2896_v8 }
 0x288   :  { %2070 = vmatprep.subr.bf16.mxu0 %v2777_v0 }
 0x28b   :  { %2071 = vmatpush3.bf16.msra.mxu0 %v2920_v19 }
 0x28c   :  { %2072 = vmatprep.subr.bf16.mxu0 %v2777_v0 }
 0x28f   :  { %2073 = vmatpush3.bf16.msra.mxu0 %v2924_v20 }
 0x290   :  { %2074 = vmatprep.subr.bf16.mxu0 %v2777_v0 }
 0x293   :  { %2075 = vmatpush3.bf16.msra.mxu0 %v2927_v21 }
 0x294   :  { %2076 = vmatprep.subr.bf16.mxu0 %v2777_v0 }
 0x297   :  { %2077 = vmatpush3.bf16.msra.mxu0 %v2932_v22 }
 0x298   :  { %2078 = vmatprep.subr.bf16.mxu0 %v2777_v0 }
 0x29b   :  { %2079 = vmatpush3.bf16.msra.mxu0 %v2936_v23 }
 0x29c   :  { %2104 = vmatprep.subr.bf16.mxu0 %v2777_v0 }
 0x2df   :  { %v498_v14 = vpop.f32.mrb[4].mxu1 }
 0x2e0   :  { %v499_v15 = vadd.f32 %v2945_v24, %v498_v14  ;;  %v2062_v16 = vpop.f32.mrb[5].mxu1 }
 0x2e1   :  { %v501_v17 = vpop.f32.mrb[6].mxu1 }
 0x2e2   :  { %2549 = vtanh.f32 %v499_v15  ;;  %v502_v18 = vadd.f32 %v2945_v24, %v501_v17  ;;  %v2063_v25 = vpop.f32.mrb[7].mxu1 }
 0x2e4   :  { %2551 = vtanh.f32 %v502_v18 }
 0x2ea   :  { %v508_v28 = vpop.permute.xlu1 %507 }
 0x2ec   :  { %v2550_v26 = vpop.eup %2549  ;;  %v510_v29 = vpop.permute.xlu0 %509 }
 0x2ed   :  { %612 = vrot.lane.b32.xlu1 %v2550_v26, %s2774_s30  ;;  %v511_v30 = vadd.f32 %v2550_v26, %v508_v28 }
 0x2ee   :  { %v2552_v27 = vpop.eup %2551 }
 0x2ef   :  { %v512_v31 = vadd.f32 %v2552_v27, %v510_v29  ;;  %614 = vrot.lane.b32.xlu0 %v2552_v27, %s2774_s30 }
 0x2f1   :  { %v513_v34 = vpack.c.bf16 %v512_v31, %v511_v30 }
 0x2f3   :  { %2081 = vmatmul.mubr.bf16.vlgmr.msra.gmra.mrb[8].mxu0 %v513_v34 }
 0x2f4   :  { %2105 = vmatpush3.bf16.msra.mxu0 %v2872_v1  ;;  %2120 = vmatprep.mubr.msk.bf16.mxu0 %vm2778_vm0, %v2777_v0 }
 0x2f5   :  { %2106 = vmatprep.subr.bf16.mxu0 %v2777_v0 }
 0x2f8   :  { %2107 = vmatpush3.bf16.msra.mxu0 %v2877_v2 }
 0x2f9   :  { %2108 = vmatprep.subr.bf16.mxu0 %v2777_v0 }
 0x2fc   :  { %2109 = vmatpush3.bf16.msra.mxu0 %v2881_v3 }
 0x2fd   :  { %2110 = vmatprep.subr.bf16.mxu0 %v2777_v0 }
 0x300   :  { %2111 = vmatpush3.bf16.msra.mxu0 %v2887_v5 }
 0x301   :  { %2112 = vmatprep.subr.bf16.mxu0 %v2777_v0 }
 0x304   :  { %2113 = vmatpush3.bf16.msra.mxu0 %v2893_v7 }
 0x305   :  { %2114 = vmatprep.subr.bf16.mxu0 %v2777_v0 }
 0x308   :  { %2115 = vmatpush3.bf16.msra.mxu0 %v2901_v9 }
 0x309   :  { %2116 = vmatprep.subr.bf16.mxu0 %v2777_v0 }
 0x30c   :  { %2117 = vmatpush3.bf16.msra.mxu0 %v2907_v10 }
 0x30d   :  { %2118 = vmatprep.subr.bf16.mxu0 %v2777_v0 }
 0x310   :  { %2119 = vmatpush3.bf16.msra.mxu0 %v2913_v11 }
 0x311   :  { %2144 = vmatprep.subr.bf16.mxu0 %v2777_v0 }
 0x351   :  { %v443_v37 = vpop.f32.mrb[4].mxu0 }
 0x352   :  { %v444_v38 = vadd.f32 %v3071_v35, %v443_v37  ;;  %v2042_v39 = vpop.f32.mrb[5].mxu0 }
 0x353   :  { %v446_v45 = vpop.f32.mrb[6].mxu0 }
 0x354   :  { %2553 = vtanh.f32 %v444_v38  ;;  %v447_v46 = vadd.f32 %v3071_v35, %v446_v45  ;;  %v2043_v47 = vpop.f32.mrb[7].mxu0 }
 0x356   :  { %2555 = vtanh.f32 %v447_v46 }
 0x35e   :  { %v2554_v49 = vpop.eup %2553 }
 0x35f   :  { %557 = vrot.lane.b32.xlu1 %v2554_v49, %s2774_s30  ;;  %v613_v52 = vpop.permute.xlu1 %612 }
 0x360   :  { %v2556_v54 = vpop.eup %2555  ;;  %v616_v56 = vadd.f32 %v1737_v50, %v613_v52 }
 0x361   :  { %559 = vrot.lane.b32.xlu0 %v2556_v54, %s2774_s30  ;;  %v615_v55 = vpop.permute.xlu0 %614 }
 0x362   :  { %v617_v57 = vadd.f32 %v1738_v51, %v615_v55  ;;  %v1740_v55 = vld [vmem:[#allocation3 + $0x18] sm:$0xff]  }
 0x364   :  { %v618_v58 = vpack.c.bf16 %v617_v57, %v616_v56  ;;  %v1741_v56 = vunpack.c.l.bf16 %v1740_v55  ;;  %v1742_v57 = vunpack.c.h.bf16 %v1740_v55 }
 0x366   :  { %2121 = vmatmul.mubr.bf16.vlgmr.msra.gmra.mrb[12].mxu0 %v618_v58 }
 0x367   :  { %2145 = vmatpush3.bf16.msra.mxu0 %v2949_v32  ;;  %2160 = vmatprep.mubr.msk.bf16.mxu0 %vm2778_vm0, %v2777_v0 }
 0x368   :  { %2146 = vmatprep.subr.bf16.mxu0 %v2777_v0 }
 0x36b   :  { %2147 = vmatpush3.bf16.msra.mxu0 %v2952_v33 }
 0x36c   :  { %2148 = vmatprep.subr.bf16.mxu0 %v2777_v0 }
 0x36f   :  { %2149 = vmatpush3.bf16.msra.mxu0 %v2957_v36 }
 0x370   :  { %2150 = vmatprep.subr.bf16.mxu0 %v2777_v0 }
 0x373   :  { %2151 = vmatpush3.bf16.msra.mxu0 %v2981_v40 }
 0x374   :  { %2152 = vmatprep.subr.bf16.mxu0 %v2777_v0 }
 0x377   :  { %2153 = vmatpush3.bf16.msra.mxu0 %v2985_v41 }
 0x378   :  { %2154 = vmatprep.subr.bf16.mxu0 %v2777_v0 }
 0x37b   :  { %2155 = vmatpush3.bf16.msra.mxu0 %v2988_v42 }
 0x37c   :  { %2156 = vmatprep.subr.bf16.mxu0 %v2777_v0 }
 0x37f   :  { %2157 = vmatpush3.bf16.msra.mxu0 %v2993_v43 }
 0x380   :  { %2158 = vmatprep.subr.bf16.mxu0 %v2777_v0 }
 0x383   :  { %2159 = vmatpush3.bf16.msra.mxu0 %v2997_v44 }
 0x384   :  { %2184 = vmatprep.subr.bf16.mxu0 %v2777_v0 }
 0x3c6   :  { %v548_v59 = vpop.f32.mrb[8].mxu0 }
 0x3c7   :  { %v549_v60 = vadd.f32 %v3022_v53, %v548_v59  ;;  %v2082_v61 = vpop.f32.mrb[9].mxu0 }
 0x3c8   :  { %v551_v62 = vpop.f32.mrb[10].mxu0 }
 0x3c9   :  { %2557 = vtanh.f32 %v549_v60  ;;  %v552_v63 = vadd.f32 %v3022_v53, %v551_v62  ;;  %v2083_v12 = vpop.f32.mrb[11].mxu0 }
 0x3cb   :  { %2559 = vtanh.f32 %v552_v63 }
 0x3d1   :  { %v558_v15 = vpop.permute.xlu1 %557 }
 0x3d3   :  { %v2558_v13 = vpop.eup %2557  ;;  %v560_v16 = vpop.permute.xlu0 %559 }
 0x3d4   :  { %662 = vrot.lane.b32.xlu1 %v2558_v13, %s2774_s30  ;;  %v561_v17 = vadd.f32 %v2558_v13, %v558_v15 }
 0x3d5   :  { %v2560_v14 = vpop.eup %2559 }
 0x3d6   :  { %v562_v18 = vadd.f32 %v2560_v14, %v560_v16  ;;  %664 = vrot.lane.b32.xlu0 %v2560_v14, %s2774_s30 }
 0x3d8   :  { %v563_v25 = vpack.c.bf16 %v562_v18, %v561_v17 }
 0x3da   :  { %2101 = vmatmul.mubr.bf16.vlgmr.msra.gmra.mrb[8].mxu1 %v563_v25 }
 0x3db   :  { %2125 = vmatpush3.bf16.msra.mxu1 %v2884_v4  ;;  %2140 = vmatprep.mubr.msk.bf16.mxu1 %vm2778_vm0, %v2777_v0 }
 0x3dc   :  { %2126 = vmatprep.subr.bf16.mxu1 %v2777_v0 }
 0x3df   :  { %2127 = vmatpush3.bf16.msra.mxu1 %v2891_v6 }
 0x3e0   :  { %2128 = vmatprep.subr.bf16.mxu1 %v2777_v0 }
 0x3e3   :  { %2129 = vmatpush3.bf16.msra.mxu1 %v2896_v8 }
 0x3e4   :  { %2130 = vmatprep.subr.bf16.mxu1 %v2777_v0 }
 0x3e7   :  { %2131 = vmatpush3.bf16.msra.mxu1 %v2920_v19 }
 0x3e8   :  { %2132 = vmatprep.subr.bf16.mxu1 %v2777_v0 }
 0x3eb   :  { %2133 = vmatpush3.bf16.msra.mxu1 %v2924_v20 }
 0x3ec   :  { %2134 = vmatprep.subr.bf16.mxu1 %v2777_v0 }
 0x3ef   :  { %2135 = vmatpush3.bf16.msra.mxu1 %v2927_v21 }
 0x3f0   :  { %2136 = vmatprep.subr.bf16.mxu1 %v2777_v0 }
 0x3f3   :  { %2137 = vmatpush3.bf16.msra.mxu1 %v2932_v22 }
 0x3f4   :  { %2138 = vmatprep.subr.bf16.mxu1 %v2777_v0 }
 0x3f7   :  { %2139 = vmatpush3.bf16.msra.mxu1 %v2936_v23 }
 0x3f8   :  { %2164 = vmatprep.subr.bf16.mxu1 %v2777_v0 }
 0x439   :  { %v653_v26 = vpop.f32.mrb[12].mxu0 }
 0x43a   :  { %v654_v27 = vadd.f32 %v2945_v24, %v653_v26  ;;  %v2122_v28 = vpop.f32.mrb[13].mxu0 }
 0x43b   :  { %v656_v29 = vpop.f32.mrb[14].mxu0 }
 0x43c   :  { %2561 = vtanh.f32 %v654_v27  ;;  %v657_v30 = vadd.f32 %v2945_v24, %v656_v29  ;;  %v2123_v31 = vpop.f32.mrb[15].mxu0 }
 0x43e   :  { %2563 = vtanh.f32 %v657_v30 }
 0x446   :  { %v2562_v34 = vpop.eup %2561  ;;  %v663_v37 = vpop.permute.xlu1 %662 }
 0x447   :  { %767 = vrot.lane.b32.xlu1 %v2562_v34, %s2774_s30  ;;  %v666_v45 = vadd.f32 %v2562_v34, %v663_v37 }
 0x448   :  { %v2564_v38 = vpop.eup %2563  ;;  %v665_v39 = vpop.permute.xlu0 %664 }
 0x449   :  { %v667_v46 = vadd.f32 %v2564_v38, %v665_v39  ;;  %769 = vrot.lane.b32.xlu0 %v2564_v38, %s2774_s30 }
 0x44b   :  { %v668_v47 = vpack.c.bf16 %v667_v46, %v666_v45 }
 0x44d   :  { %2141 = vmatmul.mubr.bf16.vlgmr.msra.gmra.mrb[12].mxu1 %v668_v47 }
 0x44e   :  { %2165 = vmatpush3.bf16.msra.mxu1 %v2872_v1  ;;  %2180 = vmatprep.mubr.msk.bf16.mxu1 %vm2778_vm0, %v2777_v0 }
 0x44f   :  { %2166 = vmatprep.subr.bf16.mxu1 %v2777_v0 }
 0x452   :  { %2167 = vmatpush3.bf16.msra.mxu1 %v2877_v2 }
 0x453   :  { %2168 = vmatprep.subr.bf16.mxu1 %v2777_v0 }
 0x456   :  { %2169 = vmatpush3.bf16.msra.mxu1 %v2881_v3 }
 0x457   :  { %2170 = vmatprep.subr.bf16.mxu1 %v2777_v0 }
 0x45a   :  { %2171 = vmatpush3.bf16.msra.mxu1 %v2887_v5 }
 0x45b   :  { %2172 = vmatprep.subr.bf16.mxu1 %v2777_v0 }
 0x45e   :  { %2173 = vmatpush3.bf16.msra.mxu1 %v2893_v7 }
 0x45f   :  { %2174 = vmatprep.subr.bf16.mxu1 %v2777_v0 }
 0x462   :  { %2175 = vmatpush3.bf16.msra.mxu1 %v2901_v9 }
 0x463   :  { %2176 = vmatprep.subr.bf16.mxu1 %v2777_v0 }
 0x466   :  { %2177 = vmatpush3.bf16.msra.mxu1 %v2907_v10 }
 0x467   :  { %2178 = vmatprep.subr.bf16.mxu1 %v2777_v0 }
 0x46a   :  { %2179 = vmatpush3.bf16.msra.mxu1 %v2913_v11 }
 0x46b   :  { %2204 = vmatprep.subr.bf16.mxu1 %v2777_v0 }
 0x4ad   :  { %v598_v48 = vpop.f32.mrb[8].mxu1 }
 0x4ae   :  { %v599_v49 = vadd.f32 %v3071_v35, %v598_v48  ;;  %v2102_v50 = vpop.f32.mrb[9].mxu1 }
 0x4af   :  { %v601_v51 = vpop.f32.mrb[10].mxu1 }
 0x4b0   :  { %2565 = vtanh.f32 %v599_v49  ;;  %v602_v52 = vadd.f32 %v3071_v35, %v601_v51  ;;  %v2103_v54 = vpop.f32.mrb[11].mxu1 }
 0x4b2   :  { %2567 = vtanh.f32 %v602_v52 }
 0x4b9   :  { %v768_v58 = vpop.permute.xlu1 %767 }
 0x4ba   :  { %v2566_v59 = vpop.eup %2565  ;;  %v771_v62 = vadd.f32 %v1741_v56, %v768_v58 }
 0x4bb   :  { %v770_v60 = vpop.permute.xlu0 %769  ;;  %712 = vrot.lane.b32.xlu1 %v2566_v59, %s2774_s30 }
 0x4bc   :  { %v2568_v61 = vpop.eup %2567  ;;  %v772_v63 = vadd.f32 %v1742_v57, %v770_v60 }
 0x4bd   :  { %714 = vrot.lane.b32.xlu0 %v2568_v61, %s2774_s30 }
 0x4be   :  { %v773_v12 = vpack.c.bf16 %v772_v63, %v771_v62 }
 0x4c0   :  { %2181 = vmatmul.mubr.bf16.vlgmr.msra.gmra.mrb[16].mxu1 %v773_v12 }
 0x4c1   :  { %2205 = vmatpush3.bf16.msra.mxu1 %v2949_v32  ;;  %2220 = vmatprep.mubr.msk.bf16.mxu1 %vm2778_vm0, %v2777_v0 }
 0x4c2   :  { %2206 = vmatprep.subr.bf16.mxu1 %v2777_v0 }
 0x4c5   :  { %2207 = vmatpush3.bf16.msra.mxu1 %v2952_v33 }
 0x4c6   :  { %2208 = vmatprep.subr.bf16.mxu1 %v2777_v0 }
 0x4c9   :  { %2209 = vmatpush3.bf16.msra.mxu1 %v2957_v36 }
 0x4ca   :  { %2210 = vmatprep.subr.bf16.mxu1 %v2777_v0 }
 0x4cd   :  { %2211 = vmatpush3.bf16.msra.mxu1 %v2981_v40 }
 0x4ce   :  { %2212 = vmatprep.subr.bf16.mxu1 %v2777_v0 }
 0x4d1   :  { %2213 = vmatpush3.bf16.msra.mxu1 %v2985_v41 }
 0x4d2   :  { %2214 = vmatprep.subr.bf16.mxu1 %v2777_v0 }
 0x4d5   :  { %2215 = vmatpush3.bf16.msra.mxu1 %v2988_v42 }
 0x4d6   :  { %2216 = vmatprep.subr.bf16.mxu1 %v2777_v0 }
 0x4d9   :  { %2217 = vmatpush3.bf16.msra.mxu1 %v2993_v43 }
 0x4da   :  { %2218 = vmatprep.subr.bf16.mxu1 %v2777_v0 }
 0x4dd   :  { %2219 = vmatpush3.bf16.msra.mxu1 %v2997_v44 }
 0x4de   :  { %2244 = vmatprep.subr.bf16.mxu1 %v2777_v0 }
 0x520   :  { %v703_v13 = vpop.f32.mrb[12].mxu1 }
 0x521   :  { %v704_v14 = vadd.f32 %v3022_v53, %v703_v13  ;;  %v2142_v15 = vpop.f32.mrb[13].mxu1 }
 0x522   :  { %v706_v16 = vpop.f32.mrb[14].mxu1 }
 0x523   :  { %2569 = vtanh.f32 %v704_v14  ;;  %v707_v17 = vadd.f32 %v3022_v53, %v706_v16  ;;  %v2143_v18 = vpop.f32.mrb[15].mxu1 }
 0x525   :  { %2571 = vtanh.f32 %v707_v17 }
 0x52d   :  { %v2570_v25 = vpop.eup %2569  ;;  %v713_v26 = vpop.permute.xlu1 %712 }
 0x52e   :  { %817 = vrot.lane.b32.xlu1 %v2570_v25, %s2774_s30  ;;  %v716_v29 = vadd.f32 %v2570_v25, %v713_v26 }
 0x52f   :  { %v2572_v27 = vpop.eup %2571  ;;  %v715_v28 = vpop.permute.xlu0 %714 }
 0x530   :  { %v717_v30 = vadd.f32 %v2572_v27, %v715_v28  ;;  %819 = vrot.lane.b32.xlu0 %v2572_v27, %s2774_s30  ;;  %v3231_v27 = vld [vmem:[#allocation6 + $0x40] sm:$0xff]   ;;  %v3237_v28 = vld [vmem:[#allocation6 + $0x48] sm:$0xff]  }
 0x532   :  { %v718_v31 = vpack.c.bf16 %v717_v30, %v716_v29  ;;  %v3241_v29 = vld [vmem:[#allocation6 + $0x50] sm:$0xff]  }
 0x534   :  { %2161 = vmatmul.mubr.bf16.vlgmr.msra.gmra.mrb[16].mxu0 %v718_v31 }
 0x535   :  { %2185 = vmatpush3.bf16.msra.mxu0 %v2884_v4  ;;  %2200 = vmatprep.mubr.msk.bf16.mxu0 %vm2778_vm0, %v2777_v0 }
 0x536   :  { %2186 = vmatprep.subr.bf16.mxu0 %v2777_v0 }
 0x539   :  { %2187 = vmatpush3.bf16.msra.mxu0 %v2891_v6 }
 0x53a   :  { %2188 = vmatprep.subr.bf16.mxu0 %v2777_v0 }
 0x53d   :  { %2189 = vmatpush3.bf16.msra.mxu0 %v2896_v8 }
 0x53e   :  { %2190 = vmatprep.subr.bf16.mxu0 %v2777_v0 }
 0x541   :  { %2191 = vmatpush3.bf16.msra.mxu0 %v2920_v19 }
 0x542   :  { %2192 = vmatprep.subr.bf16.mxu0 %v2777_v0 }
 0x545   :  { %2193 = vmatpush3.bf16.msra.mxu0 %v2924_v20 }
 0x546   :  { %2194 = vmatprep.subr.bf16.mxu0 %v2777_v0 }
 0x549   :  { %2195 = vmatpush3.bf16.msra.mxu0 %v2927_v21 }
 0x54a   :  { %2196 = vmatprep.subr.bf16.mxu0 %v2777_v0 }
 0x54d   :  { %2197 = vmatpush3.bf16.msra.mxu0 %v2932_v22 }
 0x54e   :  { %2198 = vmatprep.subr.bf16.mxu0 %v2777_v0 }
 0x551   :  { %2199 = vmatpush3.bf16.msra.mxu0 %v2936_v23 }
 0x552   :  { %2224 = vmatprep.subr.bf16.mxu0 %v2777_v0 }
 0x593   :  { %v808_v4 = vpop.f32.mrb[16].mxu1 }
 0x594   :  { %v809_v6 = vadd.f32 %v2945_v24, %v808_v4  ;;  %v2182_v8 = vpop.f32.mrb[17].mxu1 }
 0x595   :  { %v811_v34 = vpop.f32.mrb[18].mxu1 }
 0x596   :  { %2573 = vtanh.f32 %v809_v6  ;;  %v812_v37 = vadd.f32 %v2945_v24, %v811_v34  ;;  %v2183_v38 = vpop.f32.mrb[19].mxu1 }
 0x598   :  { %2575 = vtanh.f32 %v812_v37 }
 0x5a0   :  { %v2574_v39 = vpop.eup %2573  ;;  %v818_v45 = vpop.permute.xlu1 %817 }
 0x5a1   :  { %922 = vrot.lane.b32.xlu1 %v2574_v39, %s2774_s30  ;;  %v821_v48 = vadd.f32 %v2574_v39, %v818_v45  ;;  %v3259_v39 = vld [vmem:[#allocation6] sm:$0xff]   ;;  %v3269_v45 = vld [vmem:[#allocation6 + $0x10] sm:$0xff]  }
 0x5a2   :  { %v2576_v46 = vpop.eup %2575  ;;  %v820_v47 = vpop.permute.xlu0 %819 }
 0x5a3   :  { %v822_v49 = vadd.f32 %v2576_v46, %v820_v47  ;;  %924 = vrot.lane.b32.xlu0 %v2576_v46, %s2774_s30  ;;  %v3273_v46 = vld [vmem:[#allocation6 + $0x18] sm:$0xff]   ;;  %v3277_v47 = vld [vmem:[#allocation6 + $0x20] sm:$0xff]  }
 0x5a5   :  { %v823_v50 = vpack.c.bf16 %v822_v49, %v821_v48  ;;  %v3281_v48 = vld [vmem:[#allocation6 + $0x28] sm:$0xff]   ;;  %v3285_v49 = vld [vmem:[#allocation6 + $0x30] sm:$0xff]  }
 0x5a7   :  { %2201 = vmatmul.mubr.bf16.vlgmr.msra.gmra.mrb[20].mxu0 %v823_v50  ;;  %v3289_v50 = vld [vmem:[#allocation6 + $0x38] sm:$0xff]  }
 0x5a8   :  { %2225 = vmatpush3.bf16.msra.mxu0 %v2872_v1  ;;  %2240 = vmatprep.mubr.msk.bf16.mxu0 %vm2778_vm0, %v2777_v0 }
 0x5a9   :  { %2226 = vmatprep.subr.bf16.mxu0 %v2777_v0 }
 0x5ac   :  { %2227 = vmatpush3.bf16.msra.mxu0 %v2877_v2 }
 0x5ad   :  { %2228 = vmatprep.subr.bf16.mxu0 %v2777_v0 }
 0x5b0   :  { %2229 = vmatpush3.bf16.msra.mxu0 %v2881_v3 }
 0x5b1   :  { %2230 = vmatprep.subr.bf16.mxu0 %v2777_v0 }
 0x5b4   :  { %2231 = vmatpush3.bf16.msra.mxu0 %v2887_v5 }
 0x5b5   :  { %2232 = vmatprep.subr.bf16.mxu0 %v2777_v0 }
 0x5b8   :  { %2233 = vmatpush3.bf16.msra.mxu0 %v2893_v7 }
 0x5b9   :  { %2234 = vmatprep.subr.bf16.mxu0 %v2777_v0 }
 0x5bc   :  { %2235 = vmatpush3.bf16.msra.mxu0 %v2901_v9  ;;  %v1744_v9 = vld [vmem:[#allocation3 + $0x20] sm:$0xff]  }
 0x5bd   :  { %2236 = vmatprep.subr.bf16.mxu0 %v2777_v0  ;;  %v1745_v52 = vunpack.c.l.bf16 %v1744_v9  ;;  %v1746_v54 = vunpack.c.h.bf16 %v1744_v9  ;;  %v1748_v9 = vld [vmem:[#allocation3 + $0x28] sm:$0xff]  }
 0x5c0   :  { %2237 = vmatpush3.bf16.msra.mxu0 %v2907_v10 }
 0x5c1   :  { %2238 = vmatprep.subr.bf16.mxu0 %v2777_v0 }
 0x5c4   :  { %2239 = vmatpush3.bf16.msra.mxu0 %v2913_v11 }
 0x5c5   :  { %2264 = vmatprep.subr.bf16.mxu0 %v2777_v0 }
 0x607   :  { %v753_v1 = vpop.f32.mrb[16].mxu0 }
 0x608   :  { %v754_v2 = vadd.f32 %v3071_v35, %v753_v1  ;;  %v2162_v3 = vpop.f32.mrb[17].mxu0 }
 0x609   :  { %v756_v5 = vpop.f32.mrb[18].mxu0 }
 0x60a   :  { %2577 = vtanh.f32 %v754_v2  ;;  %v757_v7 = vadd.f32 %v3071_v35, %v756_v5  ;;  %v2163_v51 = vpop.f32.mrb[19].mxu0 }
 0x60c   :  { %2579 = vtanh.f32 %v757_v7 }
 0x613   :  { %v923_v10 = vpop.permute.xlu1 %922 }
 0x614   :  { %v2578_v55 = vpop.eup %2577  ;;  %v926_v57 = vadd.f32 %v1745_v52, %v923_v10  ;;  %v1749_v52 = vunpack.c.l.bf16 %v1748_v9 }
 0x615   :  { %867 = vrot.lane.b32.xlu1 %v2578_v55, %s2774_s30  ;;  %v925_v11 = vpop.permute.xlu0 %924 }
 0x616   :  { %v2580_v56 = vpop.eup %2579  ;;  %v927_v58 = vadd.f32 %v1746_v54, %v925_v11  ;;  %v1750_v54 = vunpack.c.h.bf16 %v1748_v9 }
 0x617   :  { %869 = vrot.lane.b32.xlu0 %v2580_v56, %s2774_s30 }
 0x618   :  { %v928_v59 = vpack.c.bf16 %v927_v58, %v926_v57 }
 0x61a   :  { %2241 = vmatmul.mubr.bf16.vlgmr.msra.gmra.mrb[24].mxu0 %v928_v59 }
 0x61b   :  { %2265 = vmatpush3.bf16.msra.mxu0 %v2949_v32  ;;  %2280 = vmatprep.mubr.msk.bf16.mxu0 %vm2778_vm0, %v2777_v0 }
 0x61c   :  { %2266 = vmatprep.subr.bf16.mxu0 %v2777_v0 }
 0x61f   :  { %2267 = vmatpush3.bf16.msra.mxu0 %v2952_v33 }
 0x620   :  { %2268 = vmatprep.subr.bf16.mxu0 %v2777_v0 }
 0x623   :  { %2269 = vmatpush3.bf16.msra.mxu0 %v2957_v36 }
 0x624   :  { %2270 = vmatprep.subr.bf16.mxu0 %v2777_v0 }
 0x627   :  { %2271 = vmatpush3.bf16.msra.mxu0 %v2981_v40 }
 0x628   :  { %2272 = vmatprep.subr.bf16.mxu0 %v2777_v0 }
 0x62b   :  { %2273 = vmatpush3.bf16.msra.mxu0 %v2985_v41 }
 0x62c   :  { %2274 = vmatprep.subr.bf16.mxu0 %v2777_v0 }
 0x62f   :  { %2275 = vmatpush3.bf16.msra.mxu0 %v2988_v42 }
 0x630   :  { %2276 = vmatprep.subr.bf16.mxu0 %v2777_v0 }
 0x633   :  { %2277 = vmatpush3.bf16.msra.mxu0 %v2993_v43 }
 0x634   :  { %2278 = vmatprep.subr.bf16.mxu0 %v2777_v0 }
 0x637   :  { %2279 = vmatpush3.bf16.msra.mxu0 %v2997_v44 }
 0x638   :  { %2304 = vmatprep.subr.bf16.mxu0 %v2777_v0 }
 0x67a   :  { %v858_v60 = vpop.f32.mrb[20].mxu0 }
 0x67b   :  { %v859_v61 = vadd.f32 %v3022_v53, %v858_v60  ;;  %v2202_v62 = vpop.f32.mrb[21].mxu0 }
 0x67c   :  { %v861_v63 = vpop.f32.mrb[22].mxu0 }
 0x67d   :  { %2581 = vtanh.f32 %v859_v61  ;;  %v862_v12 = vadd.f32 %v3022_v53, %v861_v63  ;;  %v2203_v13 = vpop.f32.mrb[23].mxu0 }
 0x67e   :  { %v3331_v13 = vld [vmem:[#allocation6 + $0x60] sm:$0xff]  }
 0x67f   :  { %2583 = vtanh.f32 %v862_v12 }
 0x687   :  { %v2582_v14 = vpop.eup %2581  ;;  %v868_v15 = vpop.permute.xlu1 %867 }
 0x688   :  { %972 = vrot.lane.b32.xlu1 %v2582_v14, %s2774_s30  ;;  %v871_v18 = vadd.f32 %v2582_v14, %v868_v15  ;;  %v3335_v14 = vld [vmem:[#allocation6 + $0x68] sm:$0xff]   ;;  %v3339_v15 = vld [vmem:[#allocation6 + $0x70] sm:$0xff]  }
 0x689   :  { %v2584_v16 = vpop.eup %2583  ;;  %v870_v17 = vpop.permute.xlu0 %869 }
 0x68a   :  { %v872_v25 = vadd.f32 %v2584_v16, %v870_v17  ;;  %974 = vrot.lane.b32.xlu0 %v2584_v16, %s2774_s30  ;;  %v3343_v16 = vld [vmem:[#allocation6 + $0x78] sm:$0xff]  }
 0x68c   :  { %v873_v26 = vpack.c.bf16 %v872_v25, %v871_v18  ;;  %v3350_v18 = vld [vmem:[%s3545_s2] ss:$0 sm:$0xff] }
 0x68e   :  { %2221 = vmatmul.mubr.bf16.vlgmr.msra.gmra.mrb[20].mxu1 %v873_v26 }
 0x68f   :  { %2245 = vmatpush3.bf16.msra.mxu1 %v3231_v27  ;;  %2260 = vmatprep.mubr.msk.bf16.mxu1 %vm2778_vm0, %v2777_v0 }
 0x690   :  { %2246 = vmatprep.subr.bf16.mxu1 %v2777_v0 }
 0x693   :  { %2247 = vmatpush3.bf16.msra.mxu1 %v3237_v28 }
 0x694   :  { %2248 = vmatprep.subr.bf16.mxu1 %v2777_v0 }
 0x697   :  { %2249 = vmatpush3.bf16.msra.mxu1 %v3241_v29 }
 0x698   :  { %2250 = vmatprep.subr.bf16.mxu1 %v2777_v0 }
 0x69b   :  { %2251 = vmatpush3.bf16.msra.mxu1 %v2920_v19 }
 0x69c   :  { %2252 = vmatprep.subr.bf16.mxu1 %v2777_v0 }
 0x69f   :  { %2253 = vmatpush3.bf16.msra.mxu1 %v2924_v20 }
 0x6a0   :  { %2254 = vmatprep.subr.bf16.mxu1 %v2777_v0 }
 0x6a3   :  { %2255 = vmatpush3.bf16.msra.mxu1 %v2927_v21 }
 0x6a4   :  { %2256 = vmatprep.subr.bf16.mxu1 %v2777_v0 }
 0x6a7   :  { %2257 = vmatpush3.bf16.msra.mxu1 %v2932_v22 }
 0x6a8   :  { %2258 = vmatprep.subr.bf16.mxu1 %v2777_v0 }
 0x6ab   :  { %2259 = vmatpush3.bf16.msra.mxu1 %v2936_v23 }
 0x6ac   :  { %2284 = vmatprep.subr.bf16.mxu1 %v2777_v0 }
 0x6ed   :  { %v963_v30 = vpop.f32.mrb[24].mxu0 }
 0x6ee   :  { %v964_v19 = vadd.f32 %v2945_v24, %v963_v30  ;;  %v2242_v31 = vpop.f32.mrb[25].mxu0 }
 0x6ef   :  { %v966_v4 = vpop.f32.mrb[26].mxu0 }
 0x6f0   :  { %2585 = vtanh.f32 %v964_v19  ;;  %v967_v20 = vadd.f32 %v2945_v24, %v966_v4  ;;  %v2243_v6 = vpop.f32.mrb[27].mxu0  ;;  %v3265_v24 = vld [vmem:[#allocation6 + $0x8] sm:$0xff]  }
 0x6f2   :  { %2587 = vtanh.f32 %v967_v20 }
 0x6fa   :  { %v2586_v21 = vpop.eup %2585  ;;  %v973_v8 = vpop.permute.xlu1 %972 }
 0x6fb   :  { %1077 = vrot.lane.b32.xlu1 %v2586_v21, %s2774_s30  ;;  %v976_v37 = vadd.f32 %v2586_v21, %v973_v8 }
 0x6fc   :  { %v2588_v22 = vpop.eup %2587  ;;  %v975_v34 = vpop.permute.xlu0 %974 }
 0x6fd   :  { %v977_v23 = vadd.f32 %v2588_v22, %v975_v34  ;;  %1079 = vrot.lane.b32.xlu0 %v2588_v22, %s2774_s30 }
 0x6ff   :  { %v978_v38 = vpack.c.bf16 %v977_v23, %v976_v37 }
 0x701   :  { %2261 = vmatmul.mubr.bf16.vlgmr.msra.gmra.mrb[24].mxu1 %v978_v38 }
 0x702   :  { %2285 = vmatpush3.bf16.msra.mxu1 %v3259_v39  ;;  %2300 = vmatprep.mubr.msk.bf16.mxu1 %vm2778_vm0, %v2777_v0 }
 0x703   :  { %2286 = vmatprep.subr.bf16.mxu1 %v2777_v0 }
 0x706   :  { %2287 = vmatpush3.bf16.msra.mxu1 %v3265_v24 }
 0x707   :  { %2288 = vmatprep.subr.bf16.mxu1 %v2777_v0 }
 0x70a   :  { %2289 = vmatpush3.bf16.msra.mxu1 %v3269_v45 }
 0x70b   :  { %2290 = vmatprep.subr.bf16.mxu1 %v2777_v0 }
 0x70e   :  { %2291 = vmatpush3.bf16.msra.mxu1 %v3273_v46 }
 0x70f   :  { %2292 = vmatprep.subr.bf16.mxu1 %v2777_v0 }
 0x712   :  { %2293 = vmatpush3.bf16.msra.mxu1 %v3277_v47 }
 0x713   :  { %2294 = vmatprep.subr.bf16.mxu1 %v2777_v0 }
 0x716   :  { %2295 = vmatpush3.bf16.msra.mxu1 %v3281_v48 }
 0x717   :  { %2296 = vmatprep.subr.bf16.mxu1 %v2777_v0 }
 0x71a   :  { %2297 = vmatpush3.bf16.msra.mxu1 %v3285_v49 }
 0x71b   :  { %2298 = vmatprep.subr.bf16.mxu1 %v2777_v0 }
 0x71e   :  { %2299 = vmatpush3.bf16.msra.mxu1 %v3289_v50 }
 0x71f   :  { %2324 = vmatprep.subr.bf16.mxu1 %v2777_v0 }
 0x761   :  { %v908_v1 = vpop.f32.mrb[20].mxu1 }
 0x762   :  { %v909_v2 = vadd.f32 %v3071_v35, %v908_v1  ;;  %v2222_v3 = vpop.f32.mrb[21].mxu1 }
 0x763   :  { %v911_v5 = vpop.f32.mrb[22].mxu1 }
 0x764   :  { %2589 = vtanh.f32 %v909_v2  ;;  %v912_v7 = vadd.f32 %v3071_v35, %v911_v5  ;;  %v2223_v51 = vpop.f32.mrb[23].mxu1  ;;  %v1752_v5 = vld [vmem:[#allocation3 + $0x30] sm:$0xff]  }
 0x765   :  { %v1754_v51 = vunpack.c.h.bf16 %v1752_v5 }
 0x766   :  { %2591 = vtanh.f32 %v912_v7  ;;  %v1753_v7 = vunpack.c.l.bf16 %v1752_v5 }
 0x76d   :  { %v1078_v10 = vpop.permute.xlu1 %1077 }
 0x76e   :  { %v2590_v55 = vpop.eup %2589  ;;  %v1081_v57 = vadd.f32 %v1749_v52, %v1078_v10 }
 0x76f   :  { %v1080_v11 = vpop.permute.xlu0 %1079  ;;  %1022 = vrot.lane.b32.xlu1 %v2590_v55, %s2774_s30 }
 0x770   :  { %v2592_v56 = vpop.eup %2591  ;;  %v1082_v58 = vadd.f32 %v1750_v54, %v1080_v11 }
 0x771   :  { %1024 = vrot.lane.b32.xlu0 %v2592_v56, %s2774_s30 }
 0x772   :  { %v1083_v59 = vpack.c.bf16 %v1082_v58, %v1081_v57  ;;  %v3378_v57 = vld [vmem:[#allocation6 + $0x80] sm:$0xff]   ;;  %v3388_v58 = vld [vmem:[#allocation6 + $0x90] sm:$0xff]  }
 0x774   :  { %2301 = vmatmul.mubr.bf16.vlgmr.msra.gmra.mrb[28].mxu1 %v1083_v59  ;;  %v3392_v59 = vld [vmem:[#allocation6 + $0x98] sm:$0xff]  }
 0x775   :  { %2325 = vmatpush3.bf16.msra.mxu1 %v2949_v32  ;;  %2340 = vmatprep.mubr.msk.bf16.mxu1 %vm2778_vm0, %v2777_v0 }
 0x776   :  { %2326 = vmatprep.subr.bf16.mxu1 %v2777_v0 }
 0x779   :  { %2327 = vmatpush3.bf16.msra.mxu1 %v2952_v33 }
 0x77a   :  { %2328 = vmatprep.subr.bf16.mxu1 %v2777_v0 }
 0x77d   :  { %2329 = vmatpush3.bf16.msra.mxu1 %v2957_v36 }
 0x77e   :  { %2330 = vmatprep.subr.bf16.mxu1 %v2777_v0 }
 0x781   :  { %2331 = vmatpush3.bf16.msra.mxu1 %v2981_v40 }
 0x782   :  { %2332 = vmatprep.subr.bf16.mxu1 %v2777_v0 }
 0x785   :  { %2333 = vmatpush3.bf16.msra.mxu1 %v2985_v41 }
 0x786   :  { %2334 = vmatprep.subr.bf16.mxu1 %v2777_v0 }
 0x789   :  { %2335 = vmatpush3.bf16.msra.mxu1 %v2988_v42 }
 0x78a   :  { %2336 = vmatprep.subr.bf16.mxu1 %v2777_v0 }
 0x78d   :  { %2337 = vmatpush3.bf16.msra.mxu1 %v2993_v43 }
 0x78e   :  { %2338 = vmatprep.subr.bf16.mxu1 %v2777_v0 }
 0x791   :  { %2339 = vmatpush3.bf16.msra.mxu1 %v2997_v44 }
 0x792   :  { %2364 = vmatprep.subr.bf16.mxu1 %v2777_v0 }
 0x7d4   :  { %v1013_v32 = vpop.f32.mrb[24].mxu1 }
 0x7d5   :  { %v1014_v33 = vadd.f32 %v3022_v53, %v1013_v32  ;;  %v2262_v36 = vpop.f32.mrb[25].mxu1  ;;  %v3396_v32 = vld [vmem:[#allocation6 + $0xa0] sm:$0xff]  }
 0x7d6   :  { %v1016_v40 = vpop.f32.mrb[26].mxu1  ;;  %v3404_v36 = vld [vmem:[#allocation6 + $0xb0] sm:$0xff]  }
 0x7d7   :  { %2593 = vtanh.f32 %v1014_v33  ;;  %v1017_v41 = vadd.f32 %v3022_v53, %v1016_v40  ;;  %v2263_v60 = vpop.f32.mrb[27].mxu1  ;;  %v3327_v53 = vld [vmem:[#allocation6 + $0x58] sm:$0xff]   ;;  %v3400_v33 = vld [vmem:[#allocation6 + $0xa8] sm:$0xff]  }
 0x7d8   :  { %v3408_v40 = vld [vmem:[#allocation6 + $0xb8] sm:$0xff]   ;;  %v3415_v60 = vld [vmem:[%s3545_s2 + $0x1] ss:$0 sm:$0xff] }
 0x7d9   :  { %2595 = vtanh.f32 %v1017_v41 }
 0x7e1   :  { %v2594_v42 = vpop.eup %2593  ;;  %v1023_v61 = vpop.permute.xlu1 %1022 }
 0x7e2   :  { %1127 = vrot.lane.b32.xlu1 %v2594_v42, %s2774_s30  ;;  %v1026_v63 = vadd.f32 %v2594_v42, %v1023_v61 }
 0x7e3   :  { %v2596_v43 = vpop.eup %2595  ;;  %v1025_v62 = vpop.permute.xlu0 %1024 }
 0x7e4   :  { %v1027_v44 = vadd.f32 %v2596_v43, %v1025_v62  ;;  %1129 = vrot.lane.b32.xlu0 %v2596_v43, %s2774_s30 }
 0x7e6   :  { %v1028_v12 = vpack.c.bf16 %v1027_v44, %v1026_v63 }
 0x7e8   :  { %2281 = vmatmul.mubr.bf16.vlgmr.msra.gmra.mrb[28].mxu0 %v1028_v12 }
 0x7e9   :  { %2305 = vmatpush3.bf16.msra.mxu0 %v3231_v27  ;;  %2320 = vmatprep.mubr.msk.bf16.mxu0 %vm2778_vm0, %v2777_v0 }
 0x7ea   :  { %2306 = vmatprep.subr.bf16.mxu0 %v2777_v0 }
 0x7ed   :  { %2307 = vmatpush3.bf16.msra.mxu0 %v3237_v28 }
 0x7ee   :  { %2308 = vmatprep.subr.bf16.mxu0 %v2777_v0 }
 0x7f1   :  { %2309 = vmatpush3.bf16.msra.mxu0 %v3241_v29 }
 0x7f2   :  { %2310 = vmatprep.subr.bf16.mxu0 %v2777_v0 }
 0x7f5   :  { %2311 = vmatpush3.bf16.msra.mxu0 %v3327_v53 }
 0x7f6   :  { %2312 = vmatprep.subr.bf16.mxu0 %v2777_v0 }
 0x7f9   :  { %2313 = vmatpush3.bf16.msra.mxu0 %v3331_v13 }
 0x7fa   :  { %2314 = vmatprep.subr.bf16.mxu0 %v2777_v0 }
 0x7fd   :  { %2315 = vmatpush3.bf16.msra.mxu0 %v3335_v14 }
 0x7fe   :  { %2316 = vmatprep.subr.bf16.mxu0 %v2777_v0 }
 0x801   :  { %2317 = vmatpush3.bf16.msra.mxu0 %v3339_v15 }
 0x802   :  { %2318 = vmatprep.subr.bf16.mxu0 %v2777_v0 }
 0x805   :  { %2319 = vmatpush3.bf16.msra.mxu0 %v3343_v16 }
 0x806   :  { %2344 = vmatprep.subr.bf16.mxu0 %v2777_v0 }
 0x847   :  { %v1118_v17 = vpop.f32.mrb[28].mxu1 }
 0x848   :  { %v1119_v25 = vadd.f32 %v3350_v18, %v1118_v17  ;;  %v2302_v26 = vpop.f32.mrb[29].mxu1 }
 0x849   :  { %v1121_v30 = vpop.f32.mrb[30].mxu1 }
 0x84a   :  { %2597 = vtanh.f32 %v1119_v25  ;;  %v1122_v19 = vadd.f32 %v3350_v18, %v1121_v30  ;;  %v2303_v31 = vpop.f32.mrb[31].mxu1 }
 0x84c   :  { %2599 = vtanh.f32 %v1122_v19 }
 0x854   :  { %v2598_v4 = vpop.eup %2597  ;;  %v1128_v20 = vpop.permute.xlu1 %1127 }
 0x855   :  { %1232 = vrot.lane.b32.xlu1 %v2598_v4, %s2774_s30  ;;  %v1131_v8 = vadd.f32 %v2598_v4, %v1128_v20 }
 0x856   :  { %v2600_v6 = vpop.eup %2599  ;;  %v1130_v21 = vpop.permute.xlu0 %1129 }
 0x857   :  { %v1132_v22 = vadd.f32 %v2600_v6, %v1130_v21  ;;  %1234 = vrot.lane.b32.xlu0 %v2600_v6, %s2774_s30 }
 0x859   :  { %v1133_v34 = vpack.c.bf16 %v1132_v22, %v1131_v8 }
 0x85b   :  { %2321 = vmatmul.mubr.bf16.vlgmr.msra.gmra.mrb[32].mxu0 %v1133_v34 }
 0x85c   :  { %2345 = vmatpush3.bf16.msra.mxu0 %v3259_v39  ;;  %2360 = vmatprep.mubr.msk.bf16.mxu0 %vm2778_vm0, %v2777_v0 }
 0x85d   :  { %2346 = vmatprep.subr.bf16.mxu0 %v2777_v0 }
 0x860   :  { %2347 = vmatpush3.bf16.msra.mxu0 %v3265_v24 }
 0x861   :  { %2348 = vmatprep.subr.bf16.mxu0 %v2777_v0 }
 0x864   :  { %2349 = vmatpush3.bf16.msra.mxu0 %v3269_v45 }
 0x865   :  { %2350 = vmatprep.subr.bf16.mxu0 %v2777_v0 }
 0x868   :  { %2351 = vmatpush3.bf16.msra.mxu0 %v3273_v46 }
 0x869   :  { %2352 = vmatprep.subr.bf16.mxu0 %v2777_v0 }
 0x86c   :  { %2353 = vmatpush3.bf16.msra.mxu0 %v3277_v47 }
 0x86d   :  { %2354 = vmatprep.subr.bf16.mxu0 %v2777_v0 }
 0x870   :  { %2355 = vmatpush3.bf16.msra.mxu0 %v3281_v48 }
 0x871   :  { %2356 = vmatprep.subr.bf16.mxu0 %v2777_v0 }
 0x874   :  { %2357 = vmatpush3.bf16.msra.mxu0 %v3285_v49 }
 0x875   :  { %2358 = vmatprep.subr.bf16.mxu0 %v2777_v0 }
 0x878   :  { %2359 = vmatpush3.bf16.msra.mxu0 %v3289_v50 }
 0x879   :  { %2384 = vmatprep.subr.bf16.mxu0 %v2777_v0 }
 0x8bb   :  { %v1063_v37 = vpop.f32.mrb[28].mxu0 }
 0x8bc   :  { %v1064_v23 = vadd.f32 %v3071_v35, %v1063_v37  ;;  %v2282_v38 = vpop.f32.mrb[29].mxu0 }
 0x8bd   :  { %v1066_v1 = vpop.f32.mrb[30].mxu0 }
 0x8be   :  { %2601 = vtanh.f32 %v1064_v23  ;;  %v1067_v2 = vadd.f32 %v3071_v35, %v1066_v1  ;;  %v2283_v3 = vpop.f32.mrb[31].mxu0  ;;  %v3384_v35 = vld [vmem:[#allocation6 + $0x88] sm:$0xff]  }
 0x8bf   :  { %v1756_v3 = vld [vmem:[#allocation3 + $0x38] sm:$0xff]  }
 0x8c0   :  { %2603 = vtanh.f32 %v1067_v2  ;;  %v1757_v5 = vunpack.c.l.bf16 %v1756_v3 }
 0x8c7   :  { %v1233_v9 = vpop.permute.xlu1 %1232 }
 0x8c8   :  { %v2602_v52 = vpop.eup %2601  ;;  %v1236_v55 = vadd.f32 %v1753_v7, %v1233_v9 }
 0x8c9   :  { %1177 = vrot.lane.b32.xlu1 %v2602_v52, %s2774_s30  ;;  %v1235_v54 = vpop.permute.xlu0 %1234 }
 0x8ca   :  { %v2604_v10 = vpop.eup %2603  ;;  %v1237_v11 = vadd.f32 %v1754_v51, %v1235_v54 }
 0x8cb   :  { %1179 = vrot.lane.b32.xlu0 %v2604_v10, %s2774_s30 }
 0x8cc   :  { %v1238_v56 = vpack.c.bf16 %v1237_v11, %v1236_v55 }
 0x8ce   :  { %2361 = vmatmul.mubr.bf16.vlgmr.msra.gmra.mrb[36].mxu0 %v1238_v56 }
 0x8cf   :  { %2385 = vmatpush3.bf16.msra.mxu0 %v3378_v57  ;;  %2400 = vmatprep.mubr.msk.bf16.mxu0 %vm2778_vm0, %v2777_v0 }
 0x8d0   :  { %2386 = vmatprep.subr.bf16.mxu0 %v2777_v0 }
 0x8d3   :  { %2387 = vmatpush3.bf16.msra.mxu0 %v3384_v35 }
 0x8d4   :  { %2388 = vmatprep.subr.bf16.mxu0 %v2777_v0 }
 0x8d7   :  { %2389 = vmatpush3.bf16.msra.mxu0 %v3388_v58 }
 0x8d8   :  { %2390 = vmatprep.subr.bf16.mxu0 %v2777_v0 }
 0x8db   :  { %2391 = vmatpush3.bf16.msra.mxu0 %v3392_v59 }
 0x8dc   :  { %2392 = vmatprep.subr.bf16.mxu0 %v2777_v0 }
 0x8df   :  { %2393 = vmatpush3.bf16.msra.mxu0 %v3396_v32 }
 0x8e0   :  { %2394 = vmatprep.subr.bf16.mxu0 %v2777_v0 }
 0x8e3   :  { %2395 = vmatpush3.bf16.msra.mxu0 %v3400_v33 }
 0x8e4   :  { %2396 = vmatprep.subr.bf16.mxu0 %v2777_v0 }
 0x8e7   :  { %2397 = vmatpush3.bf16.msra.mxu0 %v3404_v36 }
 0x8e8   :  { %2398 = vmatprep.subr.bf16.mxu0 %v2777_v0 }
 0x8eb   :  { %2399 = vmatpush3.bf16.msra.mxu0 %v3408_v40 }
 0x8ec   :  { %2424 = vmatprep.subr.bf16.mxu0 %v2777_v0 }
 0x92e   :  { %v1168_v41 = vpop.f32.mrb[32].mxu0 }
 0x92f   :  { %v1169_v42 = vadd.f32 %v3415_v60, %v1168_v41  ;;  %v2322_v61 = vpop.f32.mrb[33].mxu0 }
 0x930   :  { %v1171_v43 = vpop.f32.mrb[34].mxu0 }
 0x931   :  { %2605 = vtanh.f32 %v1169_v42  ;;  %v1172_v62 = vadd.f32 %v3415_v60, %v1171_v43  ;;  %v2323_v63 = vpop.f32.mrb[35].mxu0 }
 0x933   :  { %2607 = vtanh.f32 %v1172_v62 }
 0x93b   :  { %v2606_v44 = vpop.eup %2605  ;;  %v1178_v12 = vpop.permute.xlu1 %1177 }
 0x93c   :  { %1282 = vrot.lane.b32.xlu1 %v2606_v44, %s2774_s30  ;;  %v1181_v26 = vadd.f32 %v2606_v44, %v1178_v12 }
 0x93d   :  { %v2608_v17 = vpop.eup %2607  ;;  %v1180_v25 = vpop.permute.xlu0 %1179 }
 0x93e   :  { %v1182_v30 = vadd.f32 %v2608_v17, %v1180_v25  ;;  %1284 = vrot.lane.b32.xlu0 %v2608_v17, %s2774_s30 }
 0x940   :  { %v1183_v19 = vpack.c.bf16 %v1182_v30, %v1181_v26 }
 0x942   :  { %2341 = vmatmul.mubr.bf16.vlgmr.msra.gmra.mrb[32].mxu1 %v1183_v19 }
 0x943   :  { %2365 = vmatpush3.bf16.msra.mxu1 %v3231_v27  ;;  %2380 = vmatprep.mubr.msk.bf16.mxu1 %vm2778_vm0, %v2777_v0 }
 0x944   :  { %2366 = vmatprep.subr.bf16.mxu1 %v2777_v0 }
 0x947   :  { %2367 = vmatpush3.bf16.msra.mxu1 %v3237_v28 }
 0x948   :  { %2368 = vmatprep.subr.bf16.mxu1 %v2777_v0 }
 0x94b   :  { %2369 = vmatpush3.bf16.msra.mxu1 %v3241_v29 }
 0x94c   :  { %2370 = vmatprep.subr.bf16.mxu1 %v2777_v0 }
 0x94f   :  { %2371 = vmatpush3.bf16.msra.mxu1 %v3327_v53 }
 0x950   :  { %2372 = vmatprep.subr.bf16.mxu1 %v2777_v0 }
 0x953   :  { %2373 = vmatpush3.bf16.msra.mxu1 %v3331_v13 }
 0x954   :  { %2374 = vmatprep.subr.bf16.mxu1 %v2777_v0 }
 0x957   :  { %2375 = vmatpush3.bf16.msra.mxu1 %v3335_v14 }
 0x958   :  { %2376 = vmatprep.subr.bf16.mxu1 %v2777_v0 }
 0x95b   :  { %2377 = vmatpush3.bf16.msra.mxu1 %v3339_v15 }
 0x95c   :  { %2378 = vmatprep.subr.bf16.mxu1 %v2777_v0 }
 0x95f   :  { %2379 = vmatpush3.bf16.msra.mxu1 %v3343_v16 }
 0x960   :  { %2404 = vmatprep.subr.bf16.mxu1 %v2777_v0 }
 0x9a1   :  { %v1273_v31 = vpop.f32.mrb[36].mxu0 }
 0x9a2   :  { %v1274_v4 = vadd.f32 %v3350_v18, %v1273_v31  ;;  %v2362_v20 = vpop.f32.mrb[37].mxu0  ;;  %v2533_v31 = vld [vmem:[#allocation8] sm:$0xff]  }
 0x9a3   :  { %v1276_v6 = vpop.f32.mrb[38].mxu0 }
 0x9a4   :  { %2609 = vtanh.f32 %v1274_v4  ;;  %v1277_v21 = vadd.f32 %v3350_v18, %v1276_v6  ;;  %v2363_v8 = vpop.f32.mrb[39].mxu0  ;;  %v2534_v4 = vld [vmem:[#allocation8 + $0x8] sm:$0xff]   ;;  %v2535_v6 = vld [vmem:[#allocation8 + $0x10] sm:$0xff]  }
 0x9a5   :  { %v2536_v8 = vld [vmem:[#allocation8 + $0x18] sm:$0xff]  }
 0x9a6   :  { %2611 = vtanh.f32 %v1277_v21 }
 0x9ae   :  { %v2610_v22 = vpop.eup %2609  ;;  %v1283_v34 = vpop.permute.xlu1 %1282 }
 0x9af   :  { %1387 = vrot.lane.b32.xlu1 %v2610_v22, %s2774_s30  ;;  %v1286_v38 = vadd.f32 %v2610_v22, %v1283_v34 }
 0x9b0   :  { %v2612_v37 = vpop.eup %2611  ;;  %v1285_v23 = vpop.permute.xlu0 %1284 }
 0x9b1   :  { %v1287_v1 = vadd.f32 %v2612_v37, %v1285_v23  ;;  %1389 = vrot.lane.b32.xlu0 %v2612_v37, %s2774_s30 }
 0x9b3   :  { %v1288_v2 = vpack.c.bf16 %v1287_v1, %v1286_v38 }
 0x9b5   :  { %2381 = vmatmul.mubr.bf16.vlgmr.msra.gmra.mrb[36].mxu1 %v1288_v2 }
 0x9b6   :  { %2405 = vmatpush3.bf16.msra.mxu1 %v3259_v39  ;;  %2420 = vmatprep.mubr.msk.bf16.mxu1 %vm2778_vm0, %v2777_v0 }
 0x9b7   :  { %2406 = vmatprep.subr.bf16.mxu1 %v2777_v0 }
 0x9ba   :  { %2407 = vmatpush3.bf16.msra.mxu1 %v3265_v24  ;;  %v3464_v24 = vld [vmem:[%s3545_s2 + $0x2] ss:$0 sm:$0xff] }
 0x9bb   :  { %2408 = vmatprep.subr.bf16.mxu1 %v2777_v0 }
 0x9be   :  { %2409 = vmatpush3.bf16.msra.mxu1 %v3269_v45 }
 0x9bf   :  { %2410 = vmatprep.subr.bf16.mxu1 %v2777_v0 }
 0x9c2   :  { %2411 = vmatpush3.bf16.msra.mxu1 %v3273_v46 }
 0x9c3   :  { %2412 = vmatprep.subr.bf16.mxu1 %v2777_v0 }
 0x9c6   :  { %2413 = vmatpush3.bf16.msra.mxu1 %v3277_v47 }
 0x9c7   :  { %2414 = vmatprep.subr.bf16.mxu1 %v2777_v0 }
 0x9ca   :  { %2415 = vmatpush3.bf16.msra.mxu1 %v3281_v48 }
 0x9cb   :  { %2416 = vmatprep.subr.bf16.mxu1 %v2777_v0 }
 0x9ce   :  { %2417 = vmatpush3.bf16.msra.mxu1 %v3285_v49 }
 0x9cf   :  { %2418 = vmatprep.subr.bf16.mxu1 %v2777_v0 }
 0x9d2   :  { %2419 = vmatpush3.bf16.msra.mxu1 %v3289_v50  ;;  %v1758_v50 = vunpack.c.h.bf16 %v1756_v3  ;;  %v2537_v3 = vld [vmem:[#allocation8 + $0x20] sm:$0xff]  }
 0x9d3   :  { %2444 = vmatprep.subr.bf16.mxu1 %v2777_v0 }
 0xa15   :  { %v1218_v39 = vpop.f32.mrb[32].mxu1 }
 0xa16   :  { %v1219_v45 = vadd.f32 %v3464_v24, %v1218_v39  ;;  %v2342_v46 = vpop.f32.mrb[33].mxu1 }
 0xa17   :  { %v1221_v47 = vpop.f32.mrb[34].mxu1 }
 0xa18   :  { %2613 = vtanh.f32 %v1219_v45  ;;  %v1222_v48 = vadd.f32 %v3464_v24, %v1221_v47  ;;  %v2343_v49 = vpop.f32.mrb[35].mxu1 }
 0xa1a   :  { %2615 = vtanh.f32 %v1222_v48 }
 0xa21   :  { %v1388_v7 = vpop.permute.xlu1 %1387 }
 0xa22   :  { %v2614_v51 = vpop.eup %2613  ;;  %v1391_v54 = vadd.f32 %v1757_v5, %v1388_v7  ;;  %v2538_v5 = vld [vmem:[#allocation8 + $0x28] sm:$0xff]  }
 0xa23   :  { %v1390_v9 = vpop.permute.xlu0 %1389  ;;  %1332 = vrot.lane.b32.xlu1 %v2614_v51, %s2774_s30 }
 0xa24   :  { %v2616_v52 = vpop.eup %2615  ;;  %v1392_v10 = vadd.f32 %v1758_v50, %v1390_v9  ;;  %v2539_v50 = vld [vmem:[#allocation8 + $0x30] sm:$0xff]  }
 0xa25   :  { %1334 = vrot.lane.b32.xlu0 %v2616_v52, %s2774_s30 }
 0xa26   :  { %v1393_v55 = vpack.c.bf16 %v1392_v10, %v1391_v54 }
 0xa28   :  { %2421 = vmatmul.mubr.bf16.vlgmr.msra.gmra.mrb[40].mxu1 %v1393_v55 }
 0xa29   :  { %2445 = vmatpush3.bf16.msra.mxu1 %v3378_v57  ;;  %2460 = vmatprep.mubr.msk.bf16.mxu1 %vm2778_vm0, %v2777_v0 }
 0xa2a   :  { %2446 = vmatprep.subr.bf16.mxu1 %v2777_v0 }
 0xa2d   :  { %2447 = vmatpush3.bf16.msra.mxu1 %v3384_v35 }
 0xa2e   :  { %2448 = vmatprep.subr.bf16.mxu1 %v2777_v0 }
 0xa31   :  { %2449 = vmatpush3.bf16.msra.mxu1 %v3388_v58 }
 0xa32   :  { %2450 = vmatprep.subr.bf16.mxu1 %v2777_v0 }
 0xa35   :  { %2451 = vmatpush3.bf16.msra.mxu1 %v3392_v59 }
 0xa36   :  { %2452 = vmatprep.subr.bf16.mxu1 %v2777_v0 }
 0xa39   :  { %2453 = vmatpush3.bf16.msra.mxu1 %v3396_v32 }
 0xa3a   :  { %2454 = vmatprep.subr.bf16.mxu1 %v2777_v0 }
 0xa3d   :  { %2455 = vmatpush3.bf16.msra.mxu1 %v3400_v33 }
 0xa3e   :  { %2456 = vmatprep.subr.bf16.mxu1 %v2777_v0 }
 0xa41   :  { %2457 = vmatpush3.bf16.msra.mxu1 %v3404_v36 }
 0xa42   :  { %2458 = vmatprep.subr.bf16.mxu1 %v2777_v0 }
 0xa45   :  { %2459 = vmatpush3.bf16.msra.mxu1 %v3408_v40 }
 0xa88   :  { %v1323_v11 = vpop.f32.mrb[36].mxu1 }
 0xa89   :  { %v1324_v56 = vadd.f32 %v3415_v60, %v1323_v11  ;;  %v2382_v57 = vpop.f32.mrb[37].mxu1 }
 0xa8a   :  { %v1326_v35 = vpop.f32.mrb[38].mxu1  ;;  %v1718_v57 = vld [vmem:[%s3547_s4] ss:$0 sm:$0xff]  ;;  %s1676_s4 = sshll.u32 %s2779_s16, 4  ;;  %s1677_s4 = int_to_ptr.vmem [resolvable:$true] %s1676_s4 }
 0xa8b   :  { %2617 = vtanh.f32 %v1324_v56  ;;  %v1327_v58 = vadd.f32 %v3415_v60, %v1326_v35  ;;  %v2383_v59 = vpop.f32.mrb[39].mxu1  ;;  %s2744_s1 = scalar_lea.vmem %s1677_s4, 256  ;;  %p2749_p11 = scmp.lt.s32.totalorder %s1677_s4, %s1677_s4 }
 0xa8c   :  { %p2745_p10 = scmp.ne.s32.totalorder %s1677_s4, %s2744_s1  ;;  %p2750_p12 = scmp.lt.s32.totalorder %s2744_s1, %s2744_s1 }
 0xa8d   :  { %2619 = vtanh.f32 %v1327_v58 }
 0xa8e   :  { %p2751_p13 = por %p2750_p12, %p2749_p11 }
 0xa90   :  { %p2752_p0 = pnand %p2751_p13, %p2745_p10 }
 0xa95   :  { %v2618_v32 = vpop.eup %2617  ;;  %v1333_v33 = vpop.permute.xlu1 %1332 }
 0xa96   :  { %1437 = vrot.lane.b32.xlu1 %v2618_v32, %s2774_s30  ;;  %v1336_v42 = vadd.f32 %v2618_v32, %v1333_v33 }
 0xa97   :  { %v2620_v41 = vpop.eup %2619  ;;  %v1335_v36 = vpop.permute.xlu0 %1334 }
 0xa98   :  { %v1337_v61 = vadd.f32 %v2620_v41, %v1335_v36  ;;  %1439 = vrot.lane.b32.xlu0 %v2620_v41, %s2774_s30 }
 0xa9a   :  { %v1338_v40 = vpack.c.bf16 %v1337_v61, %v1336_v42 }
 0xa9c   :  { %2401 = vmatmul.mubr.bf16.vlgmr.msra.gmra.mrb[40].mxu0 %v1338_v40 }
 0xa9d   :  { %2425 = vmatpush3.bf16.msra.mxu0 %v3231_v27  ;;  %2440 = vmatprep.mubr.msk.bf16.mxu0 %vm2778_vm0, %v2777_v0 }
 0xa9e   :  { %2426 = vmatprep.subr.bf16.mxu0 %v2777_v0 }
 0xaa1   :  { %2427 = vmatpush3.bf16.msra.mxu0 %v3237_v28 }
 0xaa2   :  { %2428 = vmatprep.subr.bf16.mxu0 %v2777_v0 }
 0xaa5   :  { %2429 = vmatpush3.bf16.msra.mxu0 %v3241_v29 }
 0xaa6   :  { %2430 = vmatprep.subr.bf16.mxu0 %v2777_v0 }
 0xaa9   :  { %2431 = vmatpush3.bf16.msra.mxu0 %v3327_v53 }
 0xaaa   :  { %2432 = vmatprep.subr.bf16.mxu0 %v2777_v0 }
 0xaad   :  { %2433 = vmatpush3.bf16.msra.mxu0 %v3331_v13 }
 0xaae   :  { %2434 = vmatprep.subr.bf16.mxu0 %v2777_v0 }
 0xab1   :  { %2435 = vmatpush3.bf16.msra.mxu0 %v3335_v14 }
 0xab2   :  { %2436 = vmatprep.subr.bf16.mxu0 %v2777_v0 }
 0xab5   :  { %2437 = vmatpush3.bf16.msra.mxu0 %v3339_v15 }
 0xab6   :  { %2438 = vmatprep.subr.bf16.mxu0 %v2777_v0 }
 0xab9   :  { %2439 = vmatpush3.bf16.msra.mxu0 %v3343_v16 }
 0xaba   :  { %2464 = vmatprep.subr.bf16.mxu0 %v2777_v0 }
 0xafb   :  { %v1428_v27 = vpop.f32.mrb[40].mxu1 }
 0xafc   :  { %v1429_v28 = vadd.f32 %v3350_v18, %v1428_v27  ;;  %v2422_v29 = vpop.f32.mrb[41].mxu1 }
 0xafd   :  { %v1431_v53 = vpop.f32.mrb[42].mxu1 }
 0xafe   :  { %2621 = vtanh.f32 %v1429_v28  ;;  %v1432_v13 = vadd.f32 %v3350_v18, %v1431_v53  ;;  %v2423_v43 = vpop.f32.mrb[43].mxu1 }
 0xb00   :  { %2623 = vtanh.f32 %v1432_v13 }
 0xb08   :  { %v2622_v14 = vpop.eup %2621  ;;  %v1438_v62 = vpop.permute.xlu1 %1437 }
 0xb09   :  { %v1441_v44 = vadd.f32 %v2622_v14, %v1438_v62 }
 0xb0a   :  { %v2624_v63 = vpop.eup %2623  ;;  %v1440_v15 = vpop.permute.xlu0 %1439 }
 0xb0b   :  { %v1442_v12 = vadd.f32 %v2624_v63, %v1440_v15 }
 0xb0d   :  { %v1443_v17 = vpack.c.bf16 %v1442_v12, %v1441_v44 }
 0xb0f   :  { %2441 = vmatmul.mubr.bf16.vlgmr.msra.gmra.mrb[44].mxu0 %v1443_v17 }
 0xb10   :  { %2480 = vmatprep.mubr.msk.bf16.mxu0 %vm2778_vm0, %v2777_v0  ;;  %2465 = vmatpush3.bf16.msra.mxu0 %v2533_v31 }
 0xb11   :  { %2466 = vmatprep.subr.bf16.mxu0 %v2777_v0 }
 0xb14   :  { %2467 = vmatpush3.bf16.msra.mxu0 %v2534_v4 }
 0xb15   :  { %2468 = vmatprep.subr.bf16.mxu0 %v2777_v0 }
 0xb18   :  { %2469 = vmatpush3.bf16.msra.mxu0 %v2535_v6 }
 0xb19   :  { %2470 = vmatprep.subr.bf16.mxu0 %v2777_v0 }
 0xb1c   :  { %2471 = vmatpush3.bf16.msra.mxu0 %v2536_v8 }
 0xb1d   :  { %2472 = vmatprep.subr.bf16.mxu0 %v2777_v0 }
 0xb20   :  { %2473 = vmatpush3.bf16.msra.mxu0 %v2537_v3 }
 0xb21   :  { %2474 = vmatprep.subr.bf16.mxu0 %v2777_v0 }
 0xb24   :  { %2475 = vmatpush3.bf16.msra.mxu0 %v2538_v5 }
 0xb25   :  { %2476 = vmatprep.subr.bf16.mxu0 %v2777_v0 }
 0xb28   :  { %2477 = vmatpush3.bf16.msra.mxu0 %v2539_v50 }
 0xb29   :  { %2478 = vmatprep.subr.bf16.mxu0 %v2777_v0 }
 0xb6f   :  { %v1373_v16 = vpop.f32.mrb[40].mxu0 }
 0xb70   :  { %v1374_v25 = vadd.f32 %v3464_v24, %v1373_v16  ;;  %v2402_v26 = vpop.f32.mrb[41].mxu0 }
 0xb71   :  { %v1376_v30 = vpop.f32.mrb[42].mxu0 }
 0xb72   :  { %2625 = vtanh.f32 %v1374_v25  ;;  %v1377_v18 = vadd.f32 %v3464_v24, %v1376_v30  ;;  %v2403_v19 = vpop.f32.mrb[43].mxu0 }
 0xb74   :  { %2627 = vtanh.f32 %v1377_v18 }
 0xb7c   :  { %v2626_v20 = vpop.eup %2625 }
 0xb7d   :  { %1487 = vrot.lane.b32.xlu1 %v2626_v20, %s2774_s30 }
 0xb7e   :  { %v2628_v21 = vpop.eup %2627 }
 0xb7f   :  { %1489 = vrot.lane.b32.xlu0 %v2628_v21, %s2774_s30 }
 0xbe2   :  { %v1478_v22 = vpop.f32.mrb[44].mxu0 }
 0xbe3   :  { %v1479_v34 = vadd.f32 %v3415_v60, %v1478_v22  ;;  %v2442_v37 = vpop.f32.mrb[45].mxu0 }
 0xbe4   :  { %v1481_v23 = vpop.f32.mrb[46].mxu0 }
 0xbe5   :  { %2629 = vtanh.f32 %v1479_v34  ;;  %v1482_v38 = vadd.f32 %v3415_v60, %v1481_v23  ;;  %v2443_v1 = vpop.f32.mrb[47].mxu0  ;;  %v2540_v60 = vld [vmem:[#allocation8 + $0x38] sm:$0xff]  }
 0xbe6   :  { %2479 = vmatpush3.bf16.msra.mxu0 %v2540_v60 }
 0xbe7   :  { %2631 = vtanh.f32 %v1482_v38 }
 0xbef   :  { %v2630_v2 = vpop.eup %2629  ;;  %v1488_v39 = vpop.permute.xlu1 %1487 }
 0xbf0   :  { %v1491_v47 = vadd.f32 %v2630_v2, %v1488_v39 }
 0xbf1   :  { %v2632_v45 = vpop.eup %2631  ;;  %v1490_v46 = vpop.permute.xlu0 %1489 }
 0xbf2   :  { %v1492_v48 = vadd.f32 %v2632_v45, %v1490_v46 }
 0xbf4   :  { %v1493_v49 = vpack.c.bf16 %v1492_v48, %v1491_v47 }
 0xbf6   :  { %2461 = vmatmul.mubr.bf16.vlgmr.msra.gmra.mrb[44].mxu1 %v1493_v49 }
 0xcc9   :  { %v1528_v7 = vpop.f32.mrb[44].mxu1 }
 0xcca   :  { %v1529_v51 = vadd.f32 %v3464_v24, %v1528_v7  ;;  %v2462_v9 = vpop.f32.mrb[45].mxu1 }
 0xccb   :  { %v1531_v52 = vpop.f32.mrb[46].mxu1 }
 0xccc   :  { %v1532_v54 = vadd.f32 %v3464_v24, %v1531_v52  ;;  %v2463_v10 = vpop.f32.mrb[47].mxu1  ;;  %2633 = vtanh.f32 %v1529_v51 }
 0xcce   :  { %2635 = vtanh.f32 %v1532_v54 }
 0xcd6   :  { %v2634_v55 = vpop.eup %2633 }
 0xcd8   :  { %v2636_v11 = vpop.eup %2635 }
 0xcd9   :  { %v1546_v56 = vpack.c.bf16 %v2636_v11, %v2634_v55 }
 0xcdb   :  { %2481 = vmatmul.mubr.bf16.vlgmr.msra.gmra.mrb[48].mxu0 %v1546_v56 }
 0xdae   :  { %v1652_v0 = vpop.f32.mrb[48].mxu0 }
 0xdaf   :  { %v1653_v35 = vadd.f32 %v1718_v57, %v1652_v0  ;;  %v2482_v58 = vpop.f32.mrb[49].mxu0 }
 0xdb0   :  { %v1655_v59 = vpop.f32.mrb[50].mxu0 }
 0xdb1   :  { %v1659_v32 = vsub.f32 0.0, %v1653_v35  ;;  %v1656_v33 = vadd.f32 %v1718_v57, %v1655_v59  ;;  %v2483_v41 = vpop.f32.mrb[51].mxu0 }
 0xdb3   :  { %v1661_v36 = vmul.f32 1.442695, %v1659_v32  ;;  %v1660_v24 = vsub.f32 0.0, %v1656_v33 }
 0xdb5   :  { %2637 = vpow2.f32 %v1661_v36  ;;  %v1663_v42 = vmul.f32 1.442695, %v1660_v24 }
 0xdb7   :  { %2639 = vpow2.f32 %v1663_v42 }
 0xdbf   :  { %v2638_v61 = vpop.eup %2637 }
 0xdc0   :  { %v1665_v40 = vadd.f32 1.0, %v2638_v61 }
 0xdc1   :  { %v2640_v27 = vpop.eup %2639 }
 0xdc2   :  { %2641 = vrcp.f32 %v1665_v40  ;;  %v1666_v28 = vadd.f32 1.0, %v2640_v27 }
 0xdc4   :  { %2643 = vrcp.f32 %v1666_v28 }
 0xdcc   :  { %v2642_v29 = vpop.eup %2641 }
 0xdcd   :  { %1669 = vst [vmem:[#allocation9] sm:$0xff] %v2642_v29 }
 0xdce   :  { %v2644_v53 = vpop.eup %2643 }
 0xdcf   :  { %1670 = vst [vmem:[#allocation9 + $0x8] sm:$0xff] %v2644_v53 }
 0xdd0   :  { %2755 = shalt.err (!%p2752_p0)
}
 0xdd1   :  { %s2756_s19 = scalar_lea.hbm %s3548_s5, 256 }
 0xdd2   :  { %p2757_p1 = scmp.ne.s32.totalorder %s3548_s5, %s2756_s19  ;;  %p2760_p2 = scmp.lt.u32.totalorder %s2756_s19, %s3548_s5 }
 0xdd4   :  { %p2762_p3 = pnand %p2760_p2, %p2757_p1 }
 0xdd6   :  { %2765 = shalt.err (!%p2762_p3)
}
 0xdd7   :  { %s2780_s25 = smov 128   ;;  %s2781_s26 = smov 8  }
 0xdd8   :  { %1682 = dma.vmem_to_hbm [thread:$0]  %s1677_s4, 256, %s3548_s5, [#allocation5], %s2780_s25, %s2780_s25, %s2781_s26  }
 0xdd9   :  { %2770 = dma.done.wait [#allocation5], 256  }
 0xdda   :  { %2771 = vsyncadd [#allocation5], 4294967040 }
 0xddb   :  { %1686 = vsyncpa [#allocation4], 1 }
 0xddc   :  { %1687 = vsyncpa [#allocation7], 1 }
 0xddd   :  { %1688 = vsyncpa [#allocation5], 1 }

</bundles_post_ra>
